<compile_context>
chip_gen: v7x
topology: tpu7x:2x2x1
jax: 0.10.0
libtpu: 0.0.40
codegen_flags: <defaults>
</compile_context>

<pallas_src>
import functools

import jax
import jax.numpy as jnp
from jax.experimental import pallas as pl
from jax.experimental.pallas import tpu as pltpu

EXPANSION = 4
BN_EPS = 1e-5
_PAD0 = 8  # leading slack rows in the conv2 scratch (keeps all stores aligned)


def bottleneck_kernel(x_ref, w1_ref, w2_ref, w3_ref, b1_ref, b2_ref, b3_ref,
                      o_ref, pad_ref, *, W, TH):
    # x_ref: (H*W, Cin) f32 (full image, revisited across the strip axis)
    # o_ref: (TH*W, Cout) f32 (one strip)
    # pad_ref: ((TH+2)*W + 16, P) f32 scratch holding conv1 output + H halo.
    P = w1_ref.shape[1]

    t = pl.program_id(1)
    n_t = pl.num_programs(1)
    row0 = t * (TH * W)                      # first row of this strip

    w1 = w1_ref[...]                         # (Cin, P) bf16
    b1 = b1_ref[...]                         # (1, P)   f32

    def conv1(x_rows_f32):                   # (R, Cin) f32 -> (R, P) f32
        y = jnp.dot(x_rows_f32.astype(jnp.bfloat16), w1,
                    preferred_element_type=jnp.float32)
        return jnp.maximum(y + b1, 0.0)      # bn1 (folded) + relu

    # ---- conv1 + bn1 + relu for this strip, plus 1-row top/bottom halos ----
    x_main = x_ref[pl.ds(pl.multiple_of(row0, TH * W), TH * W), :]  # f32
    pad_ref[_PAD0 + W:_PAD0 + (TH + 1) * W, :] = conv1(x_main)

    @pl.when(t > 0)
    def _():
        xh = x_ref[pl.ds(pl.multiple_of(row0 - W, W), W), :]
        pad_ref[_PAD0:_PAD0 + W, :] = conv1(xh)

    @pl.when(t == 0)
    def _():
        pad_ref[_PAD0:_PAD0 + W, :] = jnp.zeros((W, P), jnp.float32)

    @pl.when(t < n_t - 1)
    def _():
        xh = x_ref[pl.ds(pl.multiple_of(row0 + TH * W, W), W), :]
        pad_ref[_PAD0 + (TH + 1) * W:_PAD0 + (TH + 2) * W, :] = conv1(xh)

    @pl.when(t == n_t - 1)
    def _():
        pad_ref[_PAD0 + (TH + 1) * W:_PAD0 + (TH + 2) * W, :] = jnp.zeros(
            (W, P), jnp.float32)

    # ---- conv2 (3x3, stride 1, pad 1) + bn2 + relu ----
    # Flat row-major pad buffer: tap (ky, kx) is just a row offset
    # ky*W + (kx-1).  Rows that wrapped across the W boundary are zeroed with
    # an edge mask (left edge for kx=0, right edge for kx=2).
    row_iota = jax.lax.broadcasted_iota(jnp.int32, (TH * W, P), 0)
    if (W & (W - 1)) == 0:
        wpos = row_iota & (W - 1)
    else:
        wpos = row_iota % W
    not_left = wpos != 0
    not_right = wpos != (W - 1)

    acc = jnp.zeros((TH * W, P), jnp.float32)
    for ky in range(3):
        for kx in range(3):
            start = _PAD0 + ky * W + (kx - 1)          # static offset >= 7
            patch = pad_ref[pl.ds(start, TH * W), :]   # (TH*W, P) f32
            if kx == 0:
                patch = jnp.where(not_left, patch, 0.0)
            elif kx == 2:
                patch = jnp.where(not_right, patch, 0.0)
            acc = acc + jnp.dot(patch.astype(jnp.bfloat16), w2_ref[ky, kx],
                                preferred_element_type=jnp.float32)
    t2 = jnp.maximum(acc + b2_ref[...], 0.0)           # (TH*W, P) f32

    # ---- conv3 (1x1) + bn3 + residual add + relu ----
    t3 = jnp.dot(t2.astype(jnp.bfloat16), w3_ref[...],
                 preferred_element_type=jnp.float32)   # (TH*W, Cout) f32
    o_ref[...] = jnp.maximum(t3 + b3_ref[...] + x_main, 0.0).astype(o_ref.dtype)


def bottleneck_forward(x_nchw, params, block_h=None):
    """x_nchw: (N, Cin, H, W) float32. Returns (N, Cin, H, W) float32."""
    (w1, g1, be1, m1, v1,
     w2, g2, be2, m2, v2,
     w3, g3, be3, m3, v3) = params

    # Fold BN (inference mode) into per-channel scale/bias.
    s1 = g1 / jnp.sqrt(v1 + BN_EPS); b1 = be1 - m1 * s1
    s2 = g2 / jnp.sqrt(v2 + BN_EPS); b2 = be2 - m2 * s2
    s3 = g3 / jnp.sqrt(v3 + BN_EPS); b3 = be3 - m3 * s3

    # PyTorch conv weights (O, I, kh, kw) -> matmul layouts, BN scale folded,
    # cast to bf16 for the MXU (halves weight DMA / VMEM).
    w1m = (jnp.transpose(w1[:, :, 0, 0], (1, 0)) * s1[None, :]
           ).astype(jnp.bfloat16)                                   # (Cin, P)
    w2m = (jnp.transpose(w2, (2, 3, 1, 0)) * s2[None, None, None, :]
           ).astype(jnp.bfloat16)                                   # (3,3,P,P)
    w3m = (jnp.transpose(w3[:, :, 0, 0], (1, 0)) * s3[None, :]
           ).astype(jnp.bfloat16)                                   # (P, 4P)

    x_nhwc = jnp.transpose(x_nchw, (0, 2, 3, 1)).astype(jnp.float32)
    N, H, W, Cin = x_nhwc.shape
    P = w1m.shape[1]
    Cout = w3m.shape[1]
    assert Cout == Cin, "residual add requires inplanes == planes * expansion"

    # Spatial strip size (rows of output per grid step).
    if block_h is None:
        block_h = H
    block_h = max(1, min(block_h, H))
    while H % block_h:
        block_h -= 1
    TH = block_h
    n_t = H // TH

    x_2d = x_nhwc.reshape(N * H * W, Cin)   # lane-dense (rows, channels) slab

    kernel = functools.partial(bottleneck_kernel, W=W, TH=TH)

    out_2d = pl.pallas_call(
        kernel,
        out_shape=jax.ShapeDtypeStruct((N * H * W, Cout), jnp.float32),
        grid_spec=pltpu.PrefetchScalarGridSpec(
            num_scalar_prefetch=0,
            grid=(N, n_t),
            in_specs=[
                pl.BlockSpec((H * W, Cin), lambda n, t: (n, 0)),
                pl.BlockSpec((Cin, P), lambda n, t: (0, 0)),
                pl.BlockSpec((3, 3, P, P), lambda n, t: (0, 0, 0, 0)),
                pl.BlockSpec((P, Cout), lambda n, t: (0, 0)),
                pl.BlockSpec((1, P), lambda n, t: (0, 0)),
                pl.BlockSpec((1, P), lambda n, t: (0, 0)),
                pl.BlockSpec((1, Cout), lambda n, t: (0, 0)),
            ],
            out_specs=pl.BlockSpec((TH * W, Cout),
                                   lambda n, t: (n * n_t + t, 0)),
            scratch_shapes=[
                pltpu.VMEM(((TH + 2) * W + 2 * _PAD0, P), jnp.float32)],
        ),
        compiler_params=pltpu.CompilerParams(
            dimension_semantics=("parallel", "parallel")),
    )(x_2d, w1m, w2m, w3m,
      b1.reshape(1, P).astype(jnp.float32),
      b2.reshape(1, P).astype(jnp.float32),
      b3.reshape(1, Cout).astype(jnp.float32))

    out_nhwc = out_2d.reshape(N, H, W, Cout)
    return jnp.transpose(out_nhwc, (0, 3, 1, 2))


def reference_forward(x, params):
    """Pure-JAX NCHW reference mirroring the PyTorch module (eval-mode BN)."""
    (w1, g1, be1, m1, v1,
     w2, g2, be2, m2, v2,
     w3, g3, be3, m3, v3) = params

    def bn(y, g, b, m, v):
        c = y.shape[1]
        rs = lambda a: a.reshape(1, c, 1, 1)
        return (y - rs(m)) / jnp.sqrt(rs(v) + BN_EPS) * rs(g) + rs(b)

    dn = ('NCHW', 'OIHW', 'NCHW')
    hi = jax.lax.Precision.HIGHEST
    out = jax.lax.conv_general_dilated(x, w1, (1, 1), 'VALID',
                                       dimension_numbers=dn, precision=hi)
    out = jax.nn.relu(bn(out, g1, be1, m1, v1))
    out = jax.lax.conv_general_dilated(out, w2, (1, 1), ((1, 1), (1, 1)),
                                       dimension_numbers=dn, precision=hi)
    out = jax.nn.relu(bn(out, g2, be2, m2, v2))
    out = jax.lax.conv_general_dilated(out, w3, (1, 1), 'VALID',
                                       dimension_numbers=dn, precision=hi)
    out = bn(out, g3, be3, m3, v3)
    return jax.nn.relu(out + x)


def init_params(key, inplanes, planes):
    ks = jax.random.split(key, 6)
    f32 = jnp.float32
    outp = planes * EXPANSION

    def bn_params(k, c):
        k1, k2, k3, k4 = jax.random.split(k, 4)
        gamma = 1.0 + 0.1 * jax.random.normal(k1, (c,), f32)
        beta = 0.1 * jax.random.normal(k2, (c,), f32)
        mean = 0.1 * jax.random.normal(k3, (c,), f32)
        var = jax.random.uniform(k4, (c,), f32, 0.5, 1.5)
        return gamma, beta, mean, var

    w1 = 0.1 * jax.random.normal(ks[0], (planes, inplanes, 1, 1), f32)
    w2 = 0.1 * jax.random.normal(ks[1], (planes, planes, 3, 3), f32)
    w3 = 0.1 * jax.random.normal(ks[2], (outp, planes, 1, 1), f32)
    g1, be1, m1, v1 = bn_params(ks[3], planes)
    g2, be2, m2, v2 = bn_params(ks[4], planes)
    g3, be3, m3, v3 = bn_params(ks[5], outp)
    return (w1, g1, be1, m1, v1,
            w2, g2, be2, m2, v2,
            w3, g3, be3, m3, v3)


if __name__ == "__main__":
    key = jax.random.PRNGKey(0)
    k_params, k_x = jax.random.split(key)

    # Small shapes consistent with the module (inplanes == planes * 4).
    N, inplanes, planes, H, W = 2, 64, 16, 16, 16
    params = init_params(k_params, inplanes, planes)
    x = jax.random.normal(k_x, (N, inplanes, H, W), jnp.float32)

    # block_h=8 -> 2 spatial strips per image (exercises halo + border paths).
    out = bottleneck_forward(x, params, block_h=8)
    out = jax.block_until_ready(out)

    ref = reference_forward(x, params)
    assert out.shape == ref.shape
    max_err = float(jnp.max(jnp.abs(out - ref)))
    # bf16 MXU inputs -> looser tolerance than a pure-f32 kernel.
    assert jnp.allclose(out, ref, atol=6e-2, rtol=6e-2), max_err

    print("KERNEL_OK")
</pallas_src>

<mosaic_0001>
module attributes {stable_mosaic.version = 11 : i64} {
  func.func @bottleneck_kernel(%arg0: i32, %arg1: i32, %arg2: memref<256x64xf32, #tpu.memory_space<vmem>>, %arg3: memref<64x16xbf16, #tpu.memory_space<vmem>>, %arg4: memref<3x3x16x16xbf16, #tpu.memory_space<vmem>>, %arg5: memref<16x64xbf16, #tpu.memory_space<vmem>>, %arg6: memref<1x16xf32, #tpu.memory_space<vmem>>, %arg7: memref<1x16xf32, #tpu.memory_space<vmem>>, %arg8: memref<1x64xf32, #tpu.memory_space<vmem>>, %arg9: memref<128x64xf32, #tpu.memory_space<vmem>>, %arg10: memref<176x16xf32, #tpu.memory_space<vmem>>) attributes {dimension_semantics = [#tpu.dimension_semantics<parallel>, #tpu.dimension_semantics<parallel>], iteration_bounds = array<i64: 2, 2>, scalar_prefetch = 0 : i64, scratch_operands = 1 : i64, tpu.core_type = #tpu.core_type<tc>, window_params = [{transform_indices = @transform_0, window_bounds = array<i64: 256, 64>}, {pipeline_mode = #tpu.pipeline_mode<synchronous>, transform_indices = @transform_1, window_bounds = array<i64: 64, 16>}, {pipeline_mode = #tpu.pipeline_mode<synchronous>, transform_indices = @transform_2, window_bounds = array<i64: 3, 3, 16, 16>}, {pipeline_mode = #tpu.pipeline_mode<synchronous>, transform_indices = @transform_3, window_bounds = array<i64: 16, 64>}, {pipeline_mode = #tpu.pipeline_mode<synchronous>, transform_indices = @transform_4, window_bounds = array<i64: 1, 16>}, {pipeline_mode = #tpu.pipeline_mode<synchronous>, transform_indices = @transform_5, window_bounds = array<i64: 1, 16>}, {pipeline_mode = #tpu.pipeline_mode<synchronous>, transform_indices = @transform_6, window_bounds = array<i64: 1, 64>}, {transform_indices = @transform_7, window_bounds = array<i64: 128, 64>}]} {
    %c128_i32 = arith.constant 128 : i32
    %0 = arith.muli %arg1, %c128_i32 : i32
    %c0 = arith.constant 0 : index
    %c0_0 = arith.constant 0 : index
    %1 = vector.load %arg3[%c0, %c0_0] : memref<64x16xbf16, #tpu.memory_space<vmem>>, vector<64x16xbf16>
    %c0_1 = arith.constant 0 : index
    %c0_2 = arith.constant 0 : index
    %2 = vector.load %arg6[%c0_1, %c0_2] : memref<1x16xf32, #tpu.memory_space<vmem>>, vector<1x16xf32>
    %3 = tpu.assume_multiple %0, 128 : i32
    %4 = arith.index_cast %3 : i32 to index
    %c0_3 = arith.constant 0 : index
    %5 = vector.load %arg2[%4, %c0_3] : memref<256x64xf32, #tpu.memory_space<vmem>>, vector<128x64xf32>
    %6 = arith.truncf %5 : vector<128x64xf32> to vector<128x64xbf16>
    %cst = arith.constant dense<0.000000e+00> : vector<128x16xf32>
    %7 = tpu.matmul %6, %1, %cst {dimension_numbers = #tpu.dot_dimension_numbers<[1], [0], [0], [1], [0, 0, 1, 1], [], []>} : vector<128x64xbf16>, vector<64x16xbf16>, vector<128x16xf32> -> vector<128x16xf32>
    %8 = vector.broadcast %2 : vector<1x16xf32> to vector<128x16xf32>
    %9 = arith.addf %7, %8 : vector<128x16xf32>
    %cst_4 = arith.constant 0.000000e+00 : f32
    %10 = vector.broadcast %cst_4 : f32 to vector<128x16xf32>
    %11 = arith.maximumf %9, %10 : vector<128x16xf32>
    %c24 = arith.constant 24 : index
    %c0_5 = arith.constant 0 : index
    %12 = vector.load %arg10[%c24, %c0_5] : memref<176x16xf32, #tpu.memory_space<vmem>>, vector<128x16xf32>
    tpu.vector_store %arg10[%c24, %c0_5], %11 {strides = array<i32>} : memref<176x16xf32, #tpu.memory_space<vmem>>, vector<128x16xf32>,
    %c0_i32 = arith.constant 0 : i32
    %13 = arith.cmpi sgt, %arg1, %c0_i32 : i32
    %14 = arith.extui %13 : i1 to i32
    %c0_i32_6 = arith.constant 0 : i32
    %15 = arith.cmpi ne, %14, %c0_i32_6 : i32
    scf.if %15 {
      %c16_i32 = arith.constant 16 : i32
      %114 = arith.subi %0, %c16_i32 : i32
      %115 = tpu.assume_multiple %114, 16 : i32
      %116 = arith.index_cast %115 : i32 to index
      %c0_85 = arith.constant 0 : index
      %117 = vector.load %arg2[%116, %c0_85] : memref<256x64xf32, #tpu.memory_space<vmem>>, vector<16x64xf32>
      %118 = arith.truncf %117 : vector<16x64xf32> to vector<16x64xbf16>
      %cst_86 = arith.constant dense<0.000000e+00> : vector<16x16xf32>
      %119 = tpu.matmul %118, %1, %cst_86 {dimension_numbers = #tpu.dot_dimension_numbers<[1], [0], [0], [1], [0, 0, 1, 1], [], []>} : vector<16x64xbf16>, vector<64x16xbf16>, vector<16x16xf32> -> vector<16x16xf32>
      %120 = vector.broadcast %2 : vector<1x16xf32> to vector<16x16xf32>
      %121 = arith.addf %119, %120 : vector<16x16xf32>
      %cst_87 = arith.constant 0.000000e+00 : f32
      %122 = vector.broadcast %cst_87 : f32 to vector<16x16xf32>
      %123 = arith.maximumf %121, %122 : vector<16x16xf32>
      %c8_88 = arith.constant 8 : index
      %c0_89 = arith.constant 0 : index
      %124 = vector.load %arg10[%c8_88, %c0_89] : memref<176x16xf32, #tpu.memory_space<vmem>>, vector<16x16xf32>
      tpu.vector_store %arg10[%c8_88, %c0_89], %123 {strides = array<i32>} : memref<176x16xf32, #tpu.memory_space<vmem>>, vector<16x16xf32>,
    } else {
    }
    %c0_i32_7 = arith.constant 0 : i32
    %16 = arith.cmpi eq, %arg1, %c0_i32_7 : i32
    %17 = arith.extui %16 : i1 to i32
    %c0_i32_8 = arith.constant 0 : i32
    %18 = arith.cmpi ne, %17, %c0_i32_8 : i32
    scf.if %18 {
      %cst_85 = arith.constant 0.000000e+00 : f32
      %114 = vector.broadcast %cst_85 : f32 to vector<16x16xf32>
      %c8_86 = arith.constant 8 : index
      %c0_87 = arith.constant 0 : index
      %115 = vector.load %arg10[%c8_86, %c0_87] : memref<176x16xf32, #tpu.memory_space<vmem>>, vector<16x16xf32>
      tpu.vector_store %arg10[%c8_86, %c0_87], %114 {strides = array<i32>} : memref<176x16xf32, #tpu.memory_space<vmem>>, vector<16x16xf32>,
    } else {
    }
    %c1_i32 = arith.constant 1 : i32
    %19 = arith.cmpi slt, %arg1, %c1_i32 : i32
    %20 = arith.extui %19 : i1 to i32
    %c0_i32_9 = arith.constant 0 : i32
    %21 = arith.cmpi ne, %20, %c0_i32_9 : i32
    scf.if %21 {
      %c128_i32_85 = arith.constant 128 : i32
      %114 = arith.addi %0, %c128_i32_85 : i32
      %115 = tpu.assume_multiple %114, 16 : i32
      %116 = arith.index_cast %115 : i32 to index
      %c0_86 = arith.constant 0 : index
      %117 = vector.load %arg2[%116, %c0_86] : memref<256x64xf32, #tpu.memory_space<vmem>>, vector<16x64xf32>
      %118 = arith.truncf %117 : vector<16x64xf32> to vector<16x64xbf16>
      %cst_87 = arith.constant dense<0.000000e+00> : vector<16x16xf32>
      %119 = tpu.matmul %118, %1, %cst_87 {dimension_numbers = #tpu.dot_dimension_numbers<[1], [0], [0], [1], [0, 0, 1, 1], [], []>} : vector<16x64xbf16>, vector<64x16xbf16>, vector<16x16xf32> -> vector<16x16xf32>
      %120 = vector.broadcast %2 : vector<1x16xf32> to vector<16x16xf32>
      %121 = arith.addf %119, %120 : vector<16x16xf32>
      %cst_88 = arith.constant 0.000000e+00 : f32
      %122 = vector.broadcast %cst_88 : f32 to vector<16x16xf32>
      %123 = arith.maximumf %121, %122 : vector<16x16xf32>
      %c152 = arith.constant 152 : index
      %c0_89 = arith.constant 0 : index
      %124 = vector.load %arg10[%c152, %c0_89] : memref<176x16xf32, #tpu.memory_space<vmem>>, vector<16x16xf32>
      tpu.vector_store %arg10[%c152, %c0_89], %123 {strides = array<i32>} : memref<176x16xf32, #tpu.memory_space<vmem>>, vector<16x16xf32>,
    } else {
    }
    %c1_i32_10 = arith.constant 1 : i32
    %22 = arith.cmpi eq, %arg1, %c1_i32_10 : i32
    %23 = arith.extui %22 : i1 to i32
    %c0_i32_11 = arith.constant 0 : i32
    %24 = arith.cmpi ne, %23, %c0_i32_11 : i32
    scf.if %24 {
      %cst_85 = arith.constant 0.000000e+00 : f32
      %114 = vector.broadcast %cst_85 : f32 to vector<16x16xf32>
      %c152 = arith.constant 152 : index
      %c0_86 = arith.constant 0 : index
      %115 = vector.load %arg10[%c152, %c0_86] : memref<176x16xf32, #tpu.memory_space<vmem>>, vector<16x16xf32>
      tpu.vector_store %arg10[%c152, %c0_86], %114 {strides = array<i32>} : memref<176x16xf32, #tpu.memory_space<vmem>>, vector<16x16xf32>,
    } else {
    }
    %25 = tpu.iota {dimensions = array<i32: 0>} : vector<128x16xi32>
    %c15_i32 = arith.constant 15 : i32
    %26 = vector.broadcast %c15_i32 : i32 to vector<128x16xi32>
    %27 = arith.andi %25, %26 : vector<128x16xi32>
    %c0_i32_12 = arith.constant 0 : i32
    %28 = vector.broadcast %c0_i32_12 : i32 to vector<128x16xi32>
    %29 = arith.cmpi ne, %27, %28 : vector<128x16xi32>
    %c15_i32_13 = arith.constant 15 : i32
    %30 = vector.broadcast %c15_i32_13 : i32 to vector<128x16xi32>
    %31 = arith.cmpi ne, %27, %30 : vector<128x16xi32>
    %cst_14 = arith.constant 0.000000e+00 : f32
    %32 = vector.broadcast %cst_14 : f32 to vector<128x16xf32>
    %c7 = arith.constant 7 : index
    %c0_15 = arith.constant 0 : index
    %33 = vector.load %arg10[%c7, %c0_15] : memref<176x16xf32, #tpu.memory_space<vmem>>, vector<128x16xf32>
    %cst_16 = arith.constant 0.000000e+00 : f32
    %34 = vector.broadcast %cst_16 : f32 to vector<128x16xf32>
    %35 = arith.select %29, %33, %34 : vector<128x16xi1>, vector<128x16xf32>
    %36 = arith.truncf %35 : vector<128x16xf32> to vector<128x16xbf16>
    %c0_17 = arith.constant 0 : index
    %c0_18 = arith.constant 0 : index
    %c0_19 = arith.constant 0 : index
    %c0_20 = arith.constant 0 : index
    %37 = vector.load %arg4[%c0_17, %c0_18, %c0_19, %c0_20] : memref<3x3x16x16xbf16, #tpu.memory_space<vmem>>, vector<1x1x16x16xbf16>
    %38 = vector.shape_cast %37 : vector<1x1x16x16xbf16> to vector<16x16xbf16>
    %cst_21 = arith.constant dense<0.000000e+00> : vector<128x16xf32>
    %39 = tpu.matmul %36, %38, %cst_21 {dimension_numbers = #tpu.dot_dimension_numbers<[1], [0], [0], [1], [0, 0, 1, 1], [], []>} : vector<128x16xbf16>, vector<16x16xbf16>, vector<128x16xf32> -> vector<128x16xf32>
    %40 = arith.addf %32, %39 : vector<128x16xf32>
    %c8 = arith.constant 8 : index
    %c0_22 = arith.constant 0 : index
    %41 = vector.load %arg10[%c8, %c0_22] : memref<176x16xf32, #tpu.memory_space<vmem>>, vector<128x16xf32>
    %42 = arith.truncf %41 : vector<128x16xf32> to vector<128x16xbf16>
    %c0_23 = arith.constant 0 : index
    %c1 = arith.constant 1 : index
    %c0_24 = arith.constant 0 : index
    %c0_25 = arith.constant 0 : index
    %43 = vector.load %arg4[%c0_23, %c1, %c0_24, %c0_25] : memref<3x3x16x16xbf16, #tpu.memory_space<vmem>>, vector<1x1x16x16xbf16>
    %44 = vector.shape_cast %43 : vector<1x1x16x16xbf16> to vector<16x16xbf16>
    %cst_26 = arith.constant dense<0.000000e+00> : vector<128x16xf32>
    %45 = tpu.matmul %42, %44, %cst_26 {dimension_numbers = #tpu.dot_dimension_numbers<[1], [0], [0], [1], [0, 0, 1, 1], [], []>} : vector<128x16xbf16>, vector<16x16xbf16>, vector<128x16xf32> -> vector<128x16xf32>
    %46 = arith.addf %40, %45 : vector<128x16xf32>
    %c9 = arith.constant 9 : index
    %c0_27 = arith.constant 0 : index
    %47 = vector.load %arg10[%c9, %c0_27] : memref<176x16xf32, #tpu.memory_space<vmem>>, vector<128x16xf32>
    %cst_28 = arith.constant 0.000000e+00 : f32
    %48 = vector.broadcast %cst_28 : f32 to vector<128x16xf32>
    %49 = arith.select %31, %47, %48 : vector<128x16xi1>, vector<128x16xf32>
    %50 = arith.truncf %49 : vector<128x16xf32> to vector<128x16xbf16>
    %c0_29 = arith.constant 0 : index
    %c2 = arith.constant 2 : index
    %c0_30 = arith.constant 0 : index
    %c0_31 = arith.constant 0 : index
    %51 = vector.load %arg4[%c0_29, %c2, %c0_30, %c0_31] : memref<3x3x16x16xbf16, #tpu.memory_space<vmem>>, vector<1x1x16x16xbf16>
    %52 = vector.shape_cast %51 : vector<1x1x16x16xbf16> to vector<16x16xbf16>
    %cst_32 = arith.constant dense<0.000000e+00> : vector<128x16xf32>
    %53 = tpu.matmul %50, %52, %cst_32 {dimension_numbers = #tpu.dot_dimension_numbers<[1], [0], [0], [1], [0, 0, 1, 1], [], []>} : vector<128x16xbf16>, vector<16x16xbf16>, vector<128x16xf32> -> vector<128x16xf32>
    %54 = arith.addf %46, %53 : vector<128x16xf32>
    %c23 = arith.constant 23 : index
    %c0_33 = arith.constant 0 : index
    %55 = vector.load %arg10[%c23, %c0_33] : memref<176x16xf32, #tpu.memory_space<vmem>>, vector<128x16xf32>
    %cst_34 = arith.constant 0.000000e+00 : f32
    %56 = vector.broadcast %cst_34 : f32 to vector<128x16xf32>
    %57 = arith.select %29, %55, %56 : vector<128x16xi1>, vector<128x16xf32>
    %58 = arith.truncf %57 : vector<128x16xf32> to vector<128x16xbf16>
    %c1_35 = arith.constant 1 : index
    %c0_36 = arith.constant 0 : index
    %c0_37 = arith.constant 0 : index
    %c0_38 = arith.constant 0 : index
    %59 = vector.load %arg4[%c1_35, %c0_36, %c0_37, %c0_38] : memref<3x3x16x16xbf16, #tpu.memory_space<vmem>>, vector<1x1x16x16xbf16>
    %60 = vector.shape_cast %59 : vector<1x1x16x16xbf16> to vector<16x16xbf16>
    %cst_39 = arith.constant dense<0.000000e+00> : vector<128x16xf32>
    %61 = tpu.matmul %58, %60, %cst_39 {dimension_numbers = #tpu.dot_dimension_numbers<[1], [0], [0], [1], [0, 0, 1, 1], [], []>} : vector<128x16xbf16>, vector<16x16xbf16>, vector<128x16xf32> -> vector<128x16xf32>
    %62 = arith.addf %54, %61 : vector<128x16xf32>
    %c24_40 = arith.constant 24 : index
    %c0_41 = arith.constant 0 : index
    %63 = vector.load %arg10[%c24_40, %c0_41] : memref<176x16xf32, #tpu.memory_space<vmem>>, vector<128x16xf32>
    %64 = arith.truncf %63 : vector<128x16xf32> to vector<128x16xbf16>
    %c1_42 = arith.constant 1 : index
    %c1_43 = arith.constant 1 : index
    %c0_44 = arith.constant 0 : index
    %c0_45 = arith.constant 0 : index
    %65 = vector.load %arg4[%c1_42, %c1_43, %c0_44, %c0_45] : memref<3x3x16x16xbf16, #tpu.memory_space<vmem>>, vector<1x1x16x16xbf16>
    %66 = vector.shape_cast %65 : vector<1x1x16x16xbf16> to vector<16x16xbf16>
    %cst_46 = arith.constant dense<0.000000e+00> : vector<128x16xf32>
    %67 = tpu.matmul %64, %66, %cst_46 {dimension_numbers = #tpu.dot_dimension_numbers<[1], [0], [0], [1], [0, 0, 1, 1], [], []>} : vector<128x16xbf16>, vector<16x16xbf16>, vector<128x16xf32> -> vector<128x16xf32>
    %68 = arith.addf %62, %67 : vector<128x16xf32>
    %c25 = arith.constant 25 : index
    %c0_47 = arith.constant 0 : index
    %69 = vector.load %arg10[%c25, %c0_47] : memref<176x16xf32, #tpu.memory_space<vmem>>, vector<128x16xf32>
    %cst_48 = arith.constant 0.000000e+00 : f32
    %70 = vector.broadcast %cst_48 : f32 to vector<128x16xf32>
    %71 = arith.select %31, %69, %70 : vector<128x16xi1>, vector<128x16xf32>
    %72 = arith.truncf %71 : vector<128x16xf32> to vector<128x16xbf16>
    %c1_49 = arith.constant 1 : index
    %c2_50 = arith.constant 2 : index
    %c0_51 = arith.constant 0 : index
    %c0_52 = arith.constant 0 : index
    %73 = vector.load %arg4[%c1_49, %c2_50, %c0_51, %c0_52] : memref<3x3x16x16xbf16, #tpu.memory_space<vmem>>, vector<1x1x16x16xbf16>
    %74 = vector.shape_cast %73 : vector<1x1x16x16xbf16> to vector<16x16xbf16>
    %cst_53 = arith.constant dense<0.000000e+00> : vector<128x16xf32>
    %75 = tpu.matmul %72, %74, %cst_53 {dimension_numbers = #tpu.dot_dimension_numbers<[1], [0], [0], [1], [0, 0, 1, 1], [], []>} : vector<128x16xbf16>, vector<16x16xbf16>, vector<128x16xf32> -> vector<128x16xf32>
    %76 = arith.addf %68, %75 : vector<128x16xf32>
    %c39 = arith.constant 39 : index
    %c0_54 = arith.constant 0 : index
    %77 = vector.load %arg10[%c39, %c0_54] : memref<176x16xf32, #tpu.memory_space<vmem>>, vector<128x16xf32>
    %cst_55 = arith.constant 0.000000e+00 : f32
    %78 = vector.broadcast %cst_55 : f32 to vector<128x16xf32>
    %79 = arith.select %29, %77, %78 : vector<128x16xi1>, vector<128x16xf32>
    %80 = arith.truncf %79 : vector<128x16xf32> to vector<128x16xbf16>
    %c2_56 = arith.constant 2 : index
    %c0_57 = arith.constant 0 : index
    %c0_58 = arith.constant 0 : index
    %c0_59 = arith.constant 0 : index
    %81 = vector.load %arg4[%c2_56, %c0_57, %c0_58, %c0_59] : memref<3x3x16x16xbf16, #tpu.memory_space<vmem>>, vector<1x1x16x16xbf16>
    %82 = vector.shape_cast %81 : vector<1x1x16x16xbf16> to vector<16x16xbf16>
    %cst_60 = arith.constant dense<0.000000e+00> : vector<128x16xf32>
    %83 = tpu.matmul %80, %82, %cst_60 {dimension_numbers = #tpu.dot_dimension_numbers<[1], [0], [0], [1], [0, 0, 1, 1], [], []>} : vector<128x16xbf16>, vector<16x16xbf16>, vector<128x16xf32> -> vector<128x16xf32>
    %84 = arith.addf %76, %83 : vector<128x16xf32>
    %c40 = arith.constant 40 : index
    %c0_61 = arith.constant 0 : index
    %85 = vector.load %arg10[%c40, %c0_61] : memref<176x16xf32, #tpu.memory_space<vmem>>, vector<128x16xf32>
    %86 = arith.truncf %85 : vector<128x16xf32> to vector<128x16xbf16>
    %c2_62 = arith.constant 2 : index
    %c1_63 = arith.constant 1 : index
    %c0_64 = arith.constant 0 : index
    %c0_65 = arith.constant 0 : index
    %87 = vector.load %arg4[%c2_62, %c1_63, %c0_64, %c0_65] : memref<3x3x16x16xbf16, #tpu.memory_space<vmem>>, vector<1x1x16x16xbf16>
    %88 = vector.shape_cast %87 : vector<1x1x16x16xbf16> to vector<16x16xbf16>
    %cst_66 = arith.constant dense<0.000000e+00> : vector<128x16xf32>
    %89 = tpu.matmul %86, %88, %cst_66 {dimension_numbers = #tpu.dot_dimension_numbers<[1], [0], [0], [1], [0, 0, 1, 1], [], []>} : vector<128x16xbf16>, vector<16x16xbf16>, vector<128x16xf32> -> vector<128x16xf32>
    %90 = arith.addf %84, %89 : vector<128x16xf32>
    %c41 = arith.constant 41 : index
    %c0_67 = arith.constant 0 : index
    %91 = vector.load %arg10[%c41, %c0_67] : memref<176x16xf32, #tpu.memory_space<vmem>>, vector<128x16xf32>
    %cst_68 = arith.constant 0.000000e+00 : f32
    %92 = vector.broadcast %cst_68 : f32 to vector<128x16xf32>
    %93 = arith.select %31, %91, %92 : vector<128x16xi1>, vector<128x16xf32>
    %94 = arith.truncf %93 : vector<128x16xf32> to vector<128x16xbf16>
    %c2_69 = arith.constant 2 : index
    %c2_70 = arith.constant 2 : index
    %c0_71 = arith.constant 0 : index
    %c0_72 = arith.constant 0 : index
    %95 = vector.load %arg4[%c2_69, %c2_70, %c0_71, %c0_72] : memref<3x3x16x16xbf16, #tpu.memory_space<vmem>>, vector<1x1x16x16xbf16>
    %96 = vector.shape_cast %95 : vector<1x1x16x16xbf16> to vector<16x16xbf16>
    %cst_73 = arith.constant dense<0.000000e+00> : vector<128x16xf32>
    %97 = tpu.matmul %94, %96, %cst_73 {dimension_numbers = #tpu.dot_dimension_numbers<[1], [0], [0], [1], [0, 0, 1, 1], [], []>} : vector<128x16xbf16>, vector<16x16xbf16>, vector<128x16xf32> -> vector<128x16xf32>
    %98 = arith.addf %90, %97 : vector<128x16xf32>
    %c0_74 = arith.constant 0 : index
    %c0_75 = arith.constant 0 : index
    %99 = vector.load %arg7[%c0_74, %c0_75] : memref<1x16xf32, #tpu.memory_space<vmem>>, vector<1x16xf32>
    %100 = vector.broadcast %99 : vector<1x16xf32> to vector<128x16xf32>
    %101 = arith.addf %98, %100 : vector<128x16xf32>
    %cst_76 = arith.constant 0.000000e+00 : f32
    %102 = vector.broadcast %cst_76 : f32 to vector<128x16xf32>
    %103 = arith.maximumf %101, %102 : vector<128x16xf32>
    %104 = arith.truncf %103 : vector<128x16xf32> to vector<128x16xbf16>
    %c0_77 = arith.constant 0 : index
    %c0_78 = arith.constant 0 : index
    %105 = vector.load %arg5[%c0_77, %c0_78] : memref<16x64xbf16, #tpu.memory_space<vmem>>, vector<16x64xbf16>
    %cst_79 = arith.constant dense<0.000000e+00> : vector<128x64xf32>
    %106 = tpu.matmul %104, %105, %cst_79 {dimension_numbers = #tpu.dot_dimension_numbers<[1], [0], [0], [1], [0, 0, 1, 1], [], []>} : vector<128x16xbf16>, vector<16x64xbf16>, vector<128x64xf32> -> vector<128x64xf32>
    %c0_80 = arith.constant 0 : index
    %c0_81 = arith.constant 0 : index
    %107 = vector.load %arg8[%c0_80, %c0_81] : memref<1x64xf32, #tpu.memory_space<vmem>>, vector<1x64xf32>
    %108 = vector.broadcast %107 : vector<1x64xf32> to vector<128x64xf32>
    %109 = arith.addf %106, %108 : vector<128x64xf32>
    %110 = arith.addf %109, %5 : vector<128x64xf32>
    %cst_82 = arith.constant 0.000000e+00 : f32
    %111 = vector.broadcast %cst_82 : f32 to vector<128x64xf32>
    %112 = arith.maximumf %110, %111 : vector<128x64xf32>
    %c0_83 = arith.constant 0 : index
    %c0_84 = arith.constant 0 : index
    %113 = vector.load %arg9[%c0_83, %c0_84] : memref<128x64xf32, #tpu.memory_space<vmem>>, vector<128x64xf32>
    tpu.vector_store %arg9[%c0_83, %c0_84], %112 {strides = array<i32>} : memref<128x64xf32, #tpu.memory_space<vmem>>, vector<128x64xf32>,
    return
  }
  func.func @transform_0(%arg0: i32, %arg1: i32) -> (i32, i32) {
    %c0_i32 = arith.constant 0 : i32
    %c0_i32_0 = arith.constant 0 : i32
    return %arg0, %c0_i32 : i32, i32
  }
  func.func @transform_1(%arg0: i32, %arg1: i32) -> (i32, i32) {
    %c0_i32 = arith.constant 0 : i32
    %c0_i32_0 = arith.constant 0 : i32
    %c0_i32_1 = arith.constant 0 : i32
    return %c0_i32, %c0_i32_0 : i32, i32
  }
  func.func @transform_2(%arg0: i32, %arg1: i32) -> (i32, i32, i32, i32) {
    %c0_i32 = arith.constant 0 : i32
    %c0_i32_0 = arith.constant 0 : i32
    %c0_i32_1 = arith.constant 0 : i32
    %c0_i32_2 = arith.constant 0 : i32
    %c0_i32_3 = arith.constant 0 : i32
    return %c0_i32, %c0_i32_0, %c0_i32_1, %c0_i32_2 : i32, i32, i32, i32
  }
  func.func @transform_3(%arg0: i32, %arg1: i32) -> (i32, i32) {
    %c0_i32 = arith.constant 0 : i32
    %c0_i32_0 = arith.constant 0 : i32
    %c0_i32_1 = arith.constant 0 : i32
    return %c0_i32, %c0_i32_0 : i32, i32
  }
  func.func @transform_4(%arg0: i32, %arg1: i32) -> (i32, i32) {
    %c0_i32 = arith.constant 0 : i32
    %c0_i32_0 = arith.constant 0 : i32
    %c0_i32_1 = arith.constant 0 : i32
    return %c0_i32, %c0_i32_0 : i32, i32
  }
  func.func @transform_5(%arg0: i32, %arg1: i32) -> (i32, i32) {
    %c0_i32 = arith.constant 0 : i32
    %c0_i32_0 = arith.constant 0 : i32
    %c0_i32_1 = arith.constant 0 : i32
    return %c0_i32, %c0_i32_0 : i32, i32
  }
  func.func @transform_6(%arg0: i32, %arg1: i32) -> (i32, i32) {
    %c0_i32 = arith.constant 0 : i32
    %c0_i32_0 = arith.constant 0 : i32
    %c0_i32_1 = arith.constant 0 : i32
    return %c0_i32, %c0_i32_0 : i32, i32
  }
  func.func @transform_7(%arg0: i32, %arg1: i32) -> (i32, i32) {
    %c2_i32 = arith.constant 2 : i32
    %0 = arith.muli %arg0, %c2_i32 : i32
    %1 = arith.addi %0, %arg1 : i32
    %c0_i32 = arith.constant 0 : i32
    %c0_i32_0 = arith.constant 0 : i32
    return %1, %c0_i32 : i32, i32
  }
}

</mosaic_0001>

<bundles_post_ra>
// kernel: tpu_custom_call.1
= control target key start
LH: loop header
LB: loop body
LE: loop exit
PB: predicated region body
PF: predicated region fallthrough
CT: control target
= control target key end

     0   :  { %s3388_s24 = smov 0   ;;  %s3390_s25 = smov 0   ;;  %s4226_s0 = inlined_call_operand.vmem [shape: f32[512,64], index: 0, kind: input, shape index: {}]   ;;  %s4227_s1 = inlined_call_operand.vmem [shape: bf16[64,16], index: 1, kind: input, shape index: {}]   ;;  %s4228_s2 = inlined_call_operand.vmem [shape: bf16[3,3,16,16], index: 2, kind: input, shape index: {}]   ;;  %s4229_s3 = inlined_call_operand.vmem [shape: bf16[16,64], index: 3, kind: input, shape index: {}]   ;;  %s4230_s4 = inlined_call_operand.vmem [shape: f32[1,16], index: 4, kind: input, shape index: {}]   ;;  %s4231_s5 = inlined_call_operand.vmem [shape: f32[1,16], index: 5, kind: input, shape index: {}]   ;;  %s4232_s6 = inlined_call_operand.vmem [shape: f32[1,64], index: 6, kind: input, shape index: {}]   ;;  %s4233_s7 = inlined_call_operand.vmem [shape: f32[512,64], index: 7, kind: output, shape index: {}]  }
   0x1   :  { %s3392_s26 = smov 0   ;;  %s3394_s27 = smov 0  }
   0x2   :  { %s3396_s28 = smov 0  }
   0x3 LB: > { %s26_s29 = sadd.s32 1, %s3332_s26  ;;  %s29_s30 = sadd.s32 1, %s3336_s27  ;;  %s3340_s28 = sphi %s3396_s28, %s17_s28   ;;  %s3336_s27 = sphi %s3394_s27, %s4417_s27   ;;  %s3332_s26 = sphi %s3392_s26, %s4416_s26   ;;  %s3328_s25 = sphi %s3390_s25, %s4415_s25   ;;  %s3324_s24 = sphi %s3388_s24, %s4414_s24  }
   0x4   : > { %p27_p0 = scmp.ge.s32.totalorder %s26_s29, 2  ;;  %p2626_p1 = scmp.ge.s32.totalorder %s3340_s28, 1 }
   0x5   : > { %p254_p2 = scmp.lt.s32.totalorder %s3340_s28, 5 }
   0x6   : > { %s4419_s29 = smov (%p27_p0, %s26_s29), 0  ;;  %s4421_s30 = smov (!%p27_p0, %s29_s30), %s3336_s27 }
   0x7   : > { %p255_p3 = pnand %p2626_p1, %p254_p2  ;;  %p31_p4 = scmp.ge.s32.totalorder %s4421_s30, 2 }
   0x9   : > { %s4423_s30 = smov (%p31_p4, %s4421_s30), 0  ;;  %258 = sbr.rel (%p255_p3) target bundleno = 1340 (0x53c), region = 48 }
  0x10   : > { %s2629_s8 = sshll.u32 %s3328_s25, 1  ;;  %v3426_v0 = vld [vmem:[%s4227_s1] sm:$0xff]   ;;  %v3432_v1 = vld [vmem:[%s4227_s1 + $0x8] sm:$0xff]   ;;  %s2627_s14 = sshll.u32 %s3328_s25, 5  ;;  %v3444_v2 = vld [vmem:[%s4227_s1 + $0x10] sm:$0xff]   ;;  %vm4250_vm0 = vcmask 523264  }
  0x11   : > { %s295_s11 = sadd.s32 %s3324_s24, %s2629_s8  ;;  %2878 = vmatprep.subr.bf16.mxu0 %v3426_v0  ;;  %3106 = vmatprep.subr.bf16.mxu1 %v3426_v0  ;;  %p289_p6 = scmp.lt.s32.totalorder %s2627_s14, 63  ;;  %v3459_v3 = vld [vmem:[%s4227_s1 + $0x18] sm:$0xff]   ;;  %v3552_v28 = vld [vmem:[%s4230_s4] ss:$0 sm:$0xff]  ;;  %vm4252_vm1 = vcmask 130048  }
  0x12   : > { %s2630_s15 = sshll.u32 %s295_s11, 4  ;;  %2879 = vmatpush3.bf16.msra.mxu0 %v3426_v0  ;;  %3110 = vmatpush3.bf16.msra.mxu1 %v3426_v0  ;;  %s2632_s19 = sshll.u32 %s3324_s24, 7 }
  0x13   : > { %p297_p5 = scmp.lt.s32.totalorder %s2630_s15, 63  ;;  %2880 = vmatprep.subr.bf16.mxu0 %v3432_v1  ;;  %3107 = vmatprep.subr.bf16.mxu1 %v3432_v1  ;;  %s4427_s14 = smov (!%p289_p6, %s2627_s14), 63 }
  0x14   : > { %s2628_s8 = sshll.u32 %s4427_s14, 3  ;;  %p2646_p7 = scmp.le.s32.totalorder %s3324_s24, 0 }
  0x15   : > { %s4425_s15 = smov (!%p297_p5, %s2630_s15), 63  ;;  %s3464_s11 = scalar_lea.vmem %s4226_s0, %s2628_s8  ;;  %vm3343_vm2 = vmmov (!%p2646_p7), 0  }
  0x16   : > { %s2631_s18 = sshll.u32 %s4425_s15, 3  ;;  %2881 = vmatpush3.bf16.msra.mxu0 %v3432_v1  ;;  %3111 = vmatpush3.bf16.msra.mxu1 %v3432_v1  ;;  %s3469_s12 = scalar_lea.vmem %s3464_s11, %s2632_s19 }
  0x17   : > { %s3452_s22 = scalar_lea.vmem %s4233_s7, %s2631_s18  ;;  %2882 = vmatprep.subr.bf16.mxu0 %v3444_v2  ;;  %3108 = vmatprep.subr.bf16.mxu1 %v3444_v2  ;;  %v3474_v4 = vld [vmem:[%s3469_s12] sm:$0xff]  ;;  %v3477_v5 = vld [vmem:[%s3469_s12 + $0x8] sm:$0xff]  ;;  %v3490_v9 = vld [vmem:[%s3469_s12 + $0x10] sm:$0xff]  ;;  %s2647_s15 = sadd.s32 (!%p2646_p7), 4294967280, %s2632_s19 }
  0x18   : > { %4260 = vst [vmem:[#allocation3_spill] sm:$0xff] %v3474_v4  ;;  %4261 = vst [vmem:[#allocation4_spill] sm:$0xff] %v3477_v5  ;;  %v3480_v6 = vld [vmem:[%s3469_s12 + $0x40] sm:$0xff]  ;;  %v332_v7 = vpack.c.bf16 %v3477_v5, %v3474_v4  ;;  %v3487_v8 = vld [vmem:[%s3469_s12 + $0x48] sm:$0xff]  ;;  %s530_s16 = scalar_lea.vmem (!%p2646_p7), %s3464_s11, %s2647_s15 }
  0x19   : > { %4262 = vst [vmem:[#allocation5_spill] sm:$0xff] %v3480_v6  ;;  %4263 = vst [vmem:[#allocation6_spill] sm:$0xff] %v3487_v8  ;;  %v3493_v10 = vld [vmem:[%s3469_s12 + $0x18] sm:$0xff]  ;;  %v336_v11 = vpack.c.bf16 %v3487_v8, %v3480_v6  ;;  %v3498_v12 = vld [vmem:[%s3469_s12 + $0x50] sm:$0xff] }
  0x1a   : > { %2883 = vmatpush3.bf16.msra.mxu0 %v3444_v2  ;;  %3112 = vmatpush3.bf16.msra.mxu1 %v3444_v2  ;;  %4264 = vst [vmem:[#allocation7_spill] sm:$0xff] %v3490_v9  ;;  %4265 = vst [vmem:[#allocation8_spill] sm:$0xff] %v3493_v10  ;;  %v3501_v13 = vld [vmem:[%s3469_s12 + $0x58] sm:$0xff]  ;;  %v3504_v14 = vld [vmem:[%s3469_s12 + $0x20] sm:$0xff]  ;;  %v333_v15 = vpack.c.bf16 %v3493_v10, %v3490_v9 }
  0x1b   : > { %2884 = vmatprep.subr.bf16.mxu0 %v3459_v3  ;;  %3109 = vmatprep.subr.bf16.mxu1 %v3459_v3  ;;  %4266 = vst [vmem:[#allocation9_spill] sm:$0xff] %v3498_v12  ;;  %4267 = vst [vmem:[#allocation10_spill] sm:$0xff] %v3501_v13  ;;  %v337_v16 = vpack.c.bf16 %v3501_v13, %v3498_v12  ;;  %v3512_v17 = vld [vmem:[%s3469_s12 + $0x28] sm:$0xff]  ;;  %v3515_v18 = vld [vmem:[%s3469_s12 + $0x60] sm:$0xff] }
  0x1c   : > { %4268 = vst [vmem:[#allocation11_spill] sm:$0xff] %v3504_v14  ;;  %2886 = vmatprep.mubr.msk.bf16.mxu0 %vm4250_vm0, %v332_v7  ;;  %4269 = vst [vmem:[#allocation12_spill] sm:$0xff] %v3512_v17  ;;  %v3518_v19 = vld [vmem:[%s3469_s12 + $0x68] sm:$0xff]  ;;  %v334_v20 = vpack.c.bf16 %v3512_v17, %v3504_v14  ;;  %2894 = vmatprep.mubr.msk.bf16.mxu1 %vm4250_vm0, %v336_v11  ;;  %v3530_v22 = vld [vmem:[%s3469_s12 + $0x30] sm:$0xff] }
  0x1d   : > { %4270 = vst [vmem:[#allocation13_spill] sm:$0xff] %v3515_v18  ;;  %4271 = vst [vmem:[#allocation14_spill] sm:$0xff] %v3518_v19  ;;  %v338_v21 = vpack.c.bf16 %v3518_v19, %v3515_v18  ;;  %v3535_v23 = vld [vmem:[%s3469_s12 + $0x38] sm:$0xff]  ;;  %v3538_v24 = vld [vmem:[%s3469_s12 + $0x70] sm:$0xff] }
  0x1e   : > { %2885 = vmatpush3.bf16.msra.mxu0 %v3459_v3  ;;  %3113 = vmatpush3.bf16.msra.mxu1 %v3459_v3  ;;  %4272 = vst [vmem:[#allocation15_spill] sm:$0xff] %v3530_v22  ;;  %4273 = vst [vmem:[#allocation16_spill] sm:$0xff] %v3535_v23  ;;  %v3541_v25 = vld [vmem:[%s3469_s12 + $0x78] sm:$0xff]  ;;  %v335_v26 = vpack.c.bf16 %v3535_v23, %v3530_v22 }
  0x1f   : > { %4274 = vst [vmem:[#allocation17_spill] sm:$0xff] %v3538_v24  ;;  %4275 = vst [vmem:[#allocation18_spill] sm:$0xff] %v3541_v25  ;;  %v339_v27 = vpack.c.bf16 %v3541_v25, %v3538_v24 }
  0x21   : > { %2887 = vmatmul.mubr.msk.bf16.vlgmr.msra.gmra.mrb[0].mxu0 %vm4250_vm0, %v333_v15  ;;  %2895 = vmatmul.mubr.msk.bf16.vlgmr.msra.gmra.mrb[0].mxu1 %vm4250_vm0, %v337_v16 }
  0x22   : > { %2890 = vmatprep.mubr.msk.bf16.mxu0 %vm4250_vm0, %v334_v20  ;;  %2898 = vmatprep.mubr.msk.bf16.mxu1 %vm4250_vm0, %v338_v21 }
  0x29   : > { %2891 = vmatmul.mubr.msk.bf16.gmra.mrb[4].mxu0 %vm4250_vm0, %v335_v26  ;;  %2899 = vmatmul.mubr.msk.bf16.gmra.mrb[4].mxu1 %vm4250_vm0, %v339_v27 }
  0xf4   : > { %v2888_v29 = vpop.f32.mrb[0].mxu0  ;;  %v2896_v30 = vpop.f32.mrb[0].mxu1 }
  0xf5   : > { %v438_v31 = vadd.f32 %v2888_v29, %v3552_v28  ;;  %v470_v32 = vadd.f32 %v2896_v30, %v3552_v28  ;;  %v429_v33 = vpop.f32.mrb[1].mxu0  ;;  %v461_v34 = vpop.f32.mrb[1].mxu1 }
  0xf6   : > { %v430_v35 = vadd.f32 %v3552_v28, %v429_v33  ;;  %v462_v36 = vadd.f32 %v3552_v28, %v461_v34  ;;  %v2889_v37 = vpop.f32.mrb[2].mxu0  ;;  %v2897_v38 = vpop.f32.mrb[2].mxu1  ;;  %v3342_v34 = vmov (!%p2646_p7), 0.0  }
  0xf7   : > { %v494_v39 = vmax.f32 %v438_v31, 0.0  ;;  %v502_v40 = vmax.f32 %v470_v32, 0.0  ;;  %v441_v41 = vadd.f32 %v2889_v37, %v3552_v28  ;;  %v473_v42 = vadd.f32 %v2897_v38, %v3552_v28  ;;  %v432_v43 = vpop.f32.mrb[3].mxu0  ;;  %v464_v44 = vpop.f32.mrb[3].mxu1  ;;  %2902 = vmatprep.subr.bf16.mxu0 (!%p2646_p7), %v3342_v34  ;;  %2910 = vmatprep.mubr.msk.bf16.mxu0 (!%p2646_p7), %vm3343_vm2, %v3342_v34 }
  0xf8   : > { %v492_v45 = vmax.f32 %v430_v35, 0.0  ;;  %v500_v46 = vmax.f32 %v462_v36, 0.0  ;;  %v433_v47 = vadd.f32 %v3552_v28, %v432_v43  ;;  %v465_v48 = vadd.f32 %v3552_v28, %v464_v44  ;;  %2903 = vmatpush3.bf16.msra.mxu0 (!%p2646_p7), %v3426_v0  ;;  %v531_v35 = vld [vmem:[%s530_s16] sm:$0xff] (!%p2646_p7)  ;;  %v532_v36 = vld [vmem:[%s530_s16 + $0x8] sm:$0xff] (!%p2646_p7) }
  0xf9   : > { %511 = vst.msk [vmem:[#allocation2 + $0x28] sm:$0xff] %vm4252_vm1, %v494_v39  ;;  %519 = vst.msk [vmem:[#allocation2 + $0x68] sm:$0xff] %vm4252_vm1, %v502_v40  ;;  %v495_v49 = vmax.f32 %v441_v41, 0.0  ;;  %v503_v50 = vmax.f32 %v473_v42, 0.0  ;;  %2904 = vmatprep.subr.bf16.mxu0 (!%p2646_p7), %v3342_v34  ;;  %v533_v37 = vpack.c.bf16 (!%p2646_p7), %v532_v36, %v531_v35 }
  0xfa   : > { %509 = vst.msk [vmem:[#allocation2 + $0x18] sm:$0xff] %vm4252_vm1, %v492_v45  ;;  %517 = vst.msk [vmem:[#allocation2 + $0x58] sm:$0xff] %vm4252_vm1, %v500_v46  ;;  %v493_v51 = vmax.f32 %v433_v47, 0.0  ;;  %v501_v52 = vmax.f32 %v465_v48, 0.0 }
  0xfb   : > { %512 = vst.msk [vmem:[#allocation2 + $0x30] sm:$0xff] %vm4252_vm1, %v495_v49  ;;  %520 = vst.msk [vmem:[#allocation2 + $0x70] sm:$0xff] %vm4252_vm1, %v503_v50 }
  0xfc   : > { %510 = vst.msk [vmem:[#allocation2 + $0x20] sm:$0xff] %vm4252_vm1, %v493_v51  ;;  %518 = vst.msk [vmem:[#allocation2 + $0x60] sm:$0xff] %vm4252_vm1, %v501_v52  ;;  %v2892_v53 = vpop.f32.mrb[4].mxu0  ;;  %v2900_v54 = vpop.f32.mrb[4].mxu1  ;;  %2905 = vmatpush3.bf16.msra.mxu0 (!%p2646_p7), %v3432_v1 }
  0xfd   : > { %v454_v55 = vadd.f32 %v2892_v53, %v3552_v28  ;;  %v486_v56 = vadd.f32 %v2900_v54, %v3552_v28  ;;  %v445_v57 = vpop.f32.mrb[5].mxu0  ;;  %v477_v58 = vpop.f32.mrb[5].mxu1  ;;  %2906 = vmatprep.subr.bf16.mxu0 (!%p2646_p7), %v3342_v34 }
  0xfe   : > { %v446_v59 = vadd.f32 %v3552_v28, %v445_v57  ;;  %v478_v60 = vadd.f32 %v3552_v28, %v477_v58  ;;  %v2893_v61 = vpop.f32.mrb[6].mxu0  ;;  %v2901_v62 = vpop.f32.mrb[6].mxu1  ;;  %528 = sbr.rel (%p2646_p7) target bundleno = 482 (0x1e2), region = 52 }
  0xff   : > { %v498_v63 = vmax.f32 %v454_v55, 0.0  ;;  %v506_v7 = vmax.f32 %v486_v56, 0.0  ;;  %v457_v11 = vadd.f32 %v2893_v61, %v3552_v28  ;;  %v489_v15 = vadd.f32 %v2901_v62, %v3552_v28  ;;  %v448_v16 = vpop.f32.mrb[7].mxu0  ;;  %v480_v20 = vpop.f32.mrb[7].mxu1 }
 0x100   : > { %v496_v21 = vmax.f32 %v446_v59, 0.0  ;;  %v504_v26 = vmax.f32 %v478_v60, 0.0  ;;  %v449_v27 = vadd.f32 %v3552_v28, %v448_v16  ;;  %v481_v29 = vadd.f32 %v3552_v28, %v480_v20  ;;  %2907 = vmatpush3.bf16.msra.mxu0 (!%p2646_p7), %v3444_v2 }
 0x101   : > { %515 = vst.msk [vmem:[#allocation2 + $0x48] sm:$0xff] %vm4252_vm1, %v498_v63  ;;  %523 = vst.msk [vmem:[#allocation2 + $0x88] sm:$0xff] %vm4252_vm1, %v506_v7  ;;  %v499_v30 = vmax.f32 %v457_v11, 0.0  ;;  %v507_v31 = vmax.f32 %v489_v15, 0.0  ;;  %2908 = vmatprep.subr.bf16.mxu0 (!%p2646_p7), %v3342_v34 }
 0x102   : > { %513 = vst.msk [vmem:[#allocation2 + $0x38] sm:$0xff] %vm4252_vm1, %v496_v21  ;;  %521 = vst.msk [vmem:[#allocation2 + $0x78] sm:$0xff] %vm4252_vm1, %v504_v26  ;;  %v497_v32 = vmax.f32 %v449_v27, 0.0  ;;  %v505_v33 = vmax.f32 %v481_v29, 0.0 }
 0x103   : > { %516 = vst.msk [vmem:[#allocation2 + $0x50] sm:$0xff] %vm4252_vm1, %v499_v30  ;;  %524 = vst.msk [vmem:[#allocation2 + $0x90] sm:$0xff] %vm4252_vm1, %v507_v31 }
 0x104   : > { %514 = vst.msk [vmem:[#allocation2 + $0x40] sm:$0xff] %vm4252_vm1, %v497_v32  ;;  %522 = vst.msk [vmem:[#allocation2 + $0x80] sm:$0xff] %vm4252_vm1, %v505_v33  ;;  %2909 = vmatpush3.bf16.msra.mxu0 (!%p2646_p7), %v3459_v3 }
 0x107   : > { %2911 = vmatmul.mubr.msk.bf16.vlgmr.msra.gmra.mrb[0].mxu0 %vm4250_vm0, %v533_v37 }
 0x1da   : > { %v571_v38 = vpop.f32.mrb[0].mxu0 }
 0x1db   : > { %v572_v39 = vadd.f32 %v3552_v28, %v571_v38  ;;  %v2912_v40 = vpop.f32.mrb[1].mxu0 }
 0x1dc   : > { %v574_v41 = vpop.f32.mrb[2].mxu0 }
 0x1dd   : > { %v578_v42 = vmax.f32 %v572_v39, 0.0  ;;  %v575_v43 = vadd.f32 %v3552_v28, %v574_v41  ;;  %v2913_v44 = vpop.f32.mrb[3].mxu0 }
 0x1df   : > { %580 = vst.msk [vmem:[#allocation2 + $0x8] sm:$0xff] %vm4252_vm1, %v578_v42  ;;  %v579_v45 = vmax.f32 %v575_v43, 0.0 }
 0x1e1   : > { %581 = vst.msk [vmem:[#allocation2 + $0x10] sm:$0xff] %vm4252_vm1, %v579_v45 }
 0x1e2 PF: > { %p2649_p8 = scmp.ne.s32.totalorder %s3324_s24, 0 }
 0x1e3   : > { %v3344_v46 = vmov (!%p2649_p8), 0.0  }
 0x1e4   : > { %585 = sbr.rel (%p2649_p8) target bundleno = 491 (0x1eb), region = 56  ;;  %586 = vst.msk [vmem:[#allocation2 + $0x8] sm:$0xff] (!%p2649_p8), %vm4252_vm1, %v3344_v46  ;;  %587 = vst.msk [vmem:[#allocation2 + $0x10] sm:$0xff] (!%p2649_p8), %vm4252_vm1, %v3344_v46 }
 0x1eb PF: > { %p2650_p9 = scmp.ge.s32.totalorder %s3324_s24, 1 }
 0x1ec   : > { %v3345_v47 = vmov (!%p2650_p9), 0.0   ;;  %vm3346_vm3 = vmmov (!%p2650_p9), 0   ;;  %v2652_v48 = vld [vmem:[%s3469_s12 + $0x80] sm:$0xff] (!%p2650_p9)  ;;  %v2653_v49 = vld [vmem:[%s3469_s12 + $0x88] sm:$0xff] (!%p2650_p9) }
 0x1ed   : > { %591 = sbr.rel (%p2650_p9) target bundleno = 728 (0x2d8), region = 60  ;;  %2914 = vmatprep.subr.bf16.mxu0 (!%p2650_p9), %v3345_v47  ;;  %2922 = vmatprep.mubr.msk.bf16.mxu0 (!%p2650_p9), %vm3346_vm3, %v3345_v47  ;;  %v596_v50 = vpack.c.bf16 (!%p2650_p9), %v2653_v49, %v2652_v48 }
 0x1ee   : > { %2915 = vmatpush3.bf16.msra.mxu0 (!%p2650_p9), %v3426_v0 }
 0x1ef   : > { %2916 = vmatprep.subr.bf16.mxu0 (!%p2650_p9), %v3345_v47 }
 0x1f2   : > { %2917 = vmatpush3.bf16.msra.mxu0 (!%p2650_p9), %v3432_v1 }
 0x1f3   : > { %2918 = vmatprep.subr.bf16.mxu0 (!%p2650_p9), %v3345_v47 }
 0x1f6   : > { %2919 = vmatpush3.bf16.msra.mxu0 %v3444_v2 }
 0x1f7   : > { %2920 = vmatprep.subr.bf16.mxu0 %v3345_v47 }
 0x1fa   : > { %2921 = vmatpush3.bf16.msra.mxu0 %v3459_v3 }
 0x1fd   : > { %2923 = vmatmul.mubr.msk.bf16.vlgmr.msra.gmra.mrb[0].mxu0 %vm4250_vm0, %v596_v50 }
 0x2d0   : > { %v634_v51 = vpop.f32.mrb[0].mxu0 }
 0x2d1   : > { %v635_v52 = vadd.f32 %v3552_v28, %v634_v51  ;;  %v2924_v53 = vpop.f32.mrb[1].mxu0 }
 0x2d2   : > { %v637_v54 = vpop.f32.mrb[2].mxu0 }
 0x2d3   : > { %v641_v0 = vmax.f32 %v635_v52, 0.0  ;;  %v638_v55 = vadd.f32 %v3552_v28, %v637_v54  ;;  %v2925_v1 = vpop.f32.mrb[3].mxu0 }
 0x2d5   : > { %643 = vst.msk [vmem:[#allocation2 + $0x98] sm:$0xff] %vm4252_vm1, %v641_v0  ;;  %v642_v2 = vmax.f32 %v638_v55, 0.0 }
 0x2d7   : > { %644 = vst.msk [vmem:[#allocation2 + $0xa0] sm:$0xff] %vm4252_vm1, %v642_v2 }
 0x2d8 PF: > { %p2655_p10 = scmp.ne.s32.totalorder %s3324_s24, 1 }
 0x2d9   : > { %v3347_v3 = vmov (!%p2655_p10), 0.0  }
 0x2da   : > { %648 = sbr.rel (%p2655_p10) target bundleno = 737 (0x2e1), region = 64  ;;  %649 = vst.msk [vmem:[#allocation2 + $0x98] sm:$0xff] (!%p2655_p10), %vm4252_vm1, %v3347_v3  ;;  %650 = vst.msk [vmem:[#allocation2 + $0xa0] sm:$0xff] (!%p2655_p10), %vm4252_vm1, %v3347_v3 }
 0x2e1 PF: > { %v3292_v28 = vld [vmem:[%s4228_s2 + $0x8] sm:$0xff]   ;;  %v3293_v56 = vld [vmem:[%s4228_s2 + $0x20] sm:$0xff]   ;;  %v759_v58 = vld [vmem:[#allocation2 + $0x10] sm:$0xff]  ;;  %v651_v26 = vlaneseq  ;;  %v4298_v18 = vmov 0 }
 0x2e2   : > { %2926 = vmatprep.subr.bf16.mxu1 %v3292_v28  ;;  %v758_v57 = vld [vmem:[#allocation2 + $0x8] sm:$0xff]  ;;  %v1411_v59 = vld [vmem:[#allocation2 + $0x18] sm:$0xff]  ;;  %2998 = vmatprep.subr.bf16.mxu0 %v3293_v56  ;;  %v1412_v61 = vld [vmem:[#allocation2 + $0x20] sm:$0xff] }
 0x2e3   : > { %2927 = vmatpush3.bf16.msra.mxu1 %v3292_v28  ;;  %v774_v60 = vpack.c.bf16 %v759_v58, %v758_v57  ;;  %v1413_v62 = vld [vmem:[#allocation2 + $0x28] sm:$0xff]  ;;  %v1414_v63 = vld [vmem:[#allocation2 + $0x30] sm:$0xff]  ;;  %2999 = vmatpush3.bf16.msra.mxu0 %v3293_v56  ;;  %v1427_v7 = vpack.c.bf16 %v1412_v61, %v1411_v59  ;;  %v1415_v16 = vld [vmem:[#allocation2 + $0x38] sm:$0xff]  ;;  %v3642_v33 = vshrl.u32 %v651_v26, 7 }
 0x2e4   : > { %v3623_v11 = vpack.c.bf16 %v1414_v63, %v1413_v62  ;;  %v3294_v15 = vld [vmem:[%s4228_s2 + $0x28] sm:$0xff]   ;;  %v1416_v20 = vld [vmem:[#allocation2 + $0x40] sm:$0xff]  ;;  %v1418_v29 = vld [vmem:[#allocation2 + $0x50] sm:$0xff] }
 0x2e5   : > { %2928 = vmatprep.mubr.msk.bf16.mxu1 %vm4252_vm1, %v774_v60  ;;  %3000 = vmatprep.mubr.msk.bf16.mxu0 %vm4252_vm1, %v1427_v7  ;;  %v3631_v21 = vpack.c.bf16 %v1416_v20, %v1415_v16  ;;  %v1417_v27 = vld [vmem:[#allocation2 + $0x48] sm:$0xff]  ;;  %v1419_v30 = vld [vmem:[#allocation2 + $0x58] sm:$0xff]  ;;  %v1420_v31 = vld [vmem:[#allocation2 + $0x60] sm:$0xff]  ;;  %v653_v37 = vadd.s32 8, %v3642_v33  ;;  %v668_v42 = vand.u32 15, %v3642_v33  ;;  %v654_v43 = vadd.s32 16, %v3642_v33 }
 0x2e6   : > { %2929 = vmatmul.mubr.msk.bf16.vlgmr.msra.gmra.mrb[0].mxu1 %vm4252_vm1, %v1427_v7  ;;  %3001 = vmatmul.mubr.msk.bf16.vlgmr.msra.gmra.mrb[0].mxu0 %vm4252_vm1, %v3623_v11  ;;  %v3295_v32 = vld [vmem:[%s4228_s2] sm:$0xff]   ;;  %v3644_v34 = vpack.c.bf16 %v1418_v29, %v1417_v27  ;;  %v3646_v35 = vpack.c.bf16 %v1420_v31, %v1419_v30  ;;  %v3651_v36 = vld [vmem:[%s4228_s2 + $0x30] sm:$0xff]   ;;  %v1421_v38 = vld [vmem:[#allocation2 + $0x68] sm:$0xff]  ;;  %v655_v44 = vadd.s32 24, %v3642_v33  ;;  %v656_v47 = vadd.s32 32, %v3642_v33 }
 0x2e7   : > { %3016 = vmatprep.subr.bf16.mxu0 %v3294_v15  ;;  %2932 = vmatprep.mubr.msk.bf16.mxu1 %vm4252_vm1, %v3623_v11  ;;  %v1422_v39 = vld [vmem:[#allocation2 + $0x70] sm:$0xff]  ;;  %v1423_v40 = vld [vmem:[#allocation2 + $0x78] sm:$0xff]  ;;  %v1424_v41 = vld [vmem:[#allocation2 + $0x80] sm:$0xff]  ;;  %v669_v45 = vand.u32 15, %v653_v37  ;;  %v657_v49 = vadd.s32 40, %v3642_v33  ;;  %vm3672_vm4 = vcmp.ne.s32.totalorder %v668_v42, 0 }
 0x2e8   : > { %3017 = vmatpush3.bf16.msra.mxu0 %v3294_v15  ;;  %3004 = vmatprep.mubr.msk.bf16.mxu0 %vm4252_vm1, %v3631_v21  ;;  %v3666_v46 = vpack.c.bf16 %v1422_v39, %v1421_v38  ;;  %v3669_v48 = vpack.c.bf16 %v1424_v41, %v1423_v40  ;;  %v716_v51 = vld [vmem:[#allocation2 + $0x7] sm:$0xff]  ;;  %v670_v52 = vand.u32 15, %v654_v43  ;;  %v671_v53 = vand.u32 15, %v655_v44  ;;  %v3691_v2 = vld [vmem:[%s4228_s2 + $0x10] sm:$0xff]   ;;  %v3697_v57 = vld [vmem:[#allocation2 + $0x19] sm:$0xff] }
 0x2e9   : > { %2944 = vmatprep.subr.bf16.mxu1 %v3295_v32  ;;  %3034 = vmatprep.subr.bf16.mxu0 %v3651_v36  ;;  %vm3678_vm5 = vcmp.ne.s32.totalorder %v669_v45, 15  ;;  %v3682_v0 = vld [vmem:[#allocation2 + $0x21] sm:$0xff]  ;;  %v672_v1 = vand.u32 15, %v656_v47  ;;  %v1426_v3 = vld [vmem:[#allocation2 + $0x90] sm:$0xff]  ;;  %v732_v56 = vsel %vm3672_vm4, %v716_v51, 0.0  ;;  %v673_v58 = vand.u32 15, %v657_v49 }
 0x2ea   : > { %2945 = vmatpush3.bf16.msra.mxu1 %v3295_v32  ;;  %4276 = vst [vmem:[#allocation19_spill] sm:$0xff] %v3669_v48  ;;  %v1425_v55 = vld [vmem:[#allocation2 + $0x88] sm:$0xff]  ;;  %v1598_v59 = vsel %vm3678_vm5, %v3682_v0, 0.0  ;;  %vm3702_vm6 = vcmp.ne.s32.totalorder %v670_v52, 0  ;;  %v3706_v61 = vld [vmem:[#allocation2 + $0x17] sm:$0xff]  ;;  %vm3708_vm7 = vcmp.ne.s32.totalorder %v671_v53, 15 }
 0x2eb   : > { %v717_v28 = vld [vmem:[#allocation2 + $0xf] sm:$0xff]  ;;  %2962 = vmatprep.subr.bf16.mxu1 %v3691_v2  ;;  %v658_v7 = vadd.s32 48, %v3642_v33  ;;  %v659_v15 = vadd.s32 56, %v3642_v33  ;;  %v660_v16 = vadd.s32 64, %v3642_v33  ;;  %v3718_v20 = vpack.c.bf16 %v1426_v3, %v1425_v55  ;;  %v3724_v29 = vld [vmem:[#allocation2 + $0x27] sm:$0xff]  ;;  %v3728_v32 = vld [vmem:[#allocation2 + $0x1f] sm:$0xff] }
 0x2ec   : > { %v3713_v63 = vld [vmem:[#allocation2 + $0x31] sm:$0xff]  ;;  %v748_v26 = vpack.c.bf16 %v717_v28, %v732_v56  ;;  %vm3720_vm8 = vcmp.ne.s32.totalorder %v672_v1, 0  ;;  %v661_v30 = vadd.s32 72, %v3642_v33  ;;  %v1613_v31 = vpack.c.bf16 %v1598_v59, %v3697_v57  ;;  %v3737_v39 = vld [vmem:[#allocation2 + $0x29] sm:$0xff]  ;;  %v3749_v43 = vld [vmem:[#allocation2 + $0x41] sm:$0xff] }
 0x2ed   : > { %4285 = vst [vmem:[#allocation20_spill] sm:$0xff] %v3718_v20  ;;  %v734_v37 = vsel %vm3702_vm6, %v3706_v61, 0.0  ;;  %vm3733_vm9 = vcmp.ne.s32.totalorder %v673_v58, 15  ;;  %v1600_v40 = vsel %vm3708_vm7, %v3713_v63, 0.0  ;;  %v3744_v41 = vld [vmem:[#allocation2 + $0x2f] sm:$0xff]  ;;  %v736_v42 = vsel %vm3720_vm8, %v3724_v29, 0.0 }
 0x2ee   : > { %2933 = vmatmul.mubr.msk.bf16.gmra.mrb[4].mxu1 %vm4252_vm1, %v3631_v21  ;;  %3005 = vmatmul.mubr.msk.bf16.gmra.mrb[4].mxu0 %vm4252_vm1, %v3644_v34  ;;  %v674_v44 = vand.u32 15, %v658_v7  ;;  %v675_v45 = vand.u32 15, %v659_v15  ;;  %v676_v47 = vand.u32 15, %v660_v16  ;;  %v677_v49 = vand.u32 15, %v661_v30  ;;  %v3760_v3 = vld [vmem:[#allocation2 + $0x39] sm:$0xff]  ;;  %v3775_v7 = vld [vmem:[#allocation2 + $0x51] sm:$0xff] }
 0x2ef   : > { %2936 = vmatprep.mubr.msk.bf16.mxu1 %vm4252_vm1, %v3644_v34  ;;  %3008 = vmatprep.mubr.msk.bf16.mxu0 %vm4252_vm1, %v3646_v35  ;;  %v663_v51 = vadd.s32 88, %v3642_v33  ;;  %v665_v52 = vadd.s32 104, %v3642_v33  ;;  %v749_v53 = vpack.c.bf16 %v3728_v32, %v734_v37  ;;  %v1614_v55 = vpack.c.bf16 %v1600_v40, %v3737_v39  ;;  %v3769_v58 = vld [vmem:[#allocation2 + $0x37] sm:$0xff]  ;;  %v3819_v25 = vld [vmem:[#allocation2 + $0x49] sm:$0xff]  ;;  %v3854_v6 = vld [vmem:[#allocation2 + $0x81] sm:$0xff] }
 0x2f0   : > { %v750_v1 = vpack.c.bf16 %v3744_v41, %v736_v42  ;;  %v1602_v28 = vsel %vm3733_vm9, %v3749_v43, 0.0  ;;  %vm3765_vm10 = vcmp.ne.s32.totalorder %v674_v44, 0  ;;  %vm3771_vm11 = vcmp.ne.s32.totalorder %v675_v45, 15  ;;  %v3813_v19 = vld [vmem:[%s4228_s2 + $0x18] sm:$0xff]   ;;  %v1968_v15 = vld [vmem:[#allocation2 + $0xa0] sm:$0xff] }
 0x2f1   : > { %vm3777_vm12 = vcmp.ne.s32.totalorder %v676_v47, 0  ;;  %v662_v16 = vadd.s32 80, %v3642_v33  ;;  %vm3784_vm13 = vcmp.ne.s32.totalorder %v677_v49, 15  ;;  %v679_v37 = vand.u32 15, %v663_v51  ;;  %v3798_v47 = vld [vmem:[%s4228_s2 + $0x38] sm:$0xff]  }
 0x2f2   : > { %v664_v40 = vadd.s32 96, %v3642_v33  ;;  %v681_v42 = vand.u32 15, %v665_v52  ;;  %v1615_v44 = vpack.c.bf16 %v1602_v28, %v3760_v3  ;;  %v738_v45 = vsel %vm3765_vm10, %v3769_v58, 0.0  ;;  %v1596_v12 = vld [vmem:[#allocation2 + $0x91] sm:$0xff]  ;;  %v3871_v5 = vld [vmem:[#allocation2 + $0x79] sm:$0xff] }
 0x2f3   : > { %v1604_v49 = vsel %vm3771_vm11, %v3775_v7, 0.0  ;;  %v678_v28 = vand.u32 15, %v662_v16  ;;  %vm3821_vm14 = vcmp.ne.s32.totalorder %v679_v37, 15  ;;  %v4300_v16 = vmov 0  ;;  %v3838_v37 = vld [vmem:[#allocation2 + $0x71] sm:$0xff] }
 0x2f4   : > { %v4299_v18 = vsel %vm3821_vm14, 4294967295, %v4298_v18  ;;  %v680_v24 = vand.u32 15, %v664_v40  ;;  %vm3825_vm15 = vcmp.ne.s32.totalorder %v681_v42, 15  ;;  %v2140_v8 = vsel %vm3678_vm5, %v3713_v63, 0.0 }
 0x2f5   : > { %v4301_v16 = vsel %vm3825_vm15, 4294967295, %v4300_v16  ;;  %v3841_v40 = vpack.c.bf16 %v2140_v8, %v3737_v39  ;;  %v2142_v42 = vsel %vm3708_vm7, %v3749_v43, 0.0  ;;  %v2144_v13 = vsel %vm3733_vm9, %v3775_v7, 0.0 }
 0x2f6   : > { %2937 = vmatmul.mubr.msk.bf16.gmra.mrb[8].mxu1 %vm4252_vm1, %v3646_v35  ;;  %3009 = vmatmul.mubr.msk.bf16.gmra.mrb[8].mxu0 %vm4252_vm1, %v3666_v46  ;;  %v3859_v8 = vpack.c.bf16 %v2142_v42, %v3760_v3  ;;  %v3862_v17 = vpack.c.bf16 %v2144_v13, %v3819_v25  ;;  %v2148_v14 = vsel %vm3784_vm13, %v3838_v37, 0.0  ;;  %v2150_v13 = vsel %vm3821_vm14, %v3854_v6, 0.0 }
 0x2f7   : > { %2940 = vmatprep.mubr.msk.bf16.mxu1 %vm4252_vm1, %v3666_v46  ;;  %3012 = vmatprep.mubr.msk.bf16.mxu0 %vm4252_vm1, %v3669_v48  ;;  %4302 = vst [vmem:[#allocation21_spill] sm:$0xff] %v3841_v40  ;;  %v1616_v10 = vpack.c.bf16 %v1604_v49, %v3819_v25  ;;  %vm3890_vm2 = vcmp.ne.s32.totalorder %v678_v28, 0  ;;  %vm3897_vm3 = vcmp.ne.s32.totalorder %v680_v24, 0  ;;  %v3901_v49 = vld [vmem:[#allocation2 + $0x67] sm:$0xff]  ;;  %v1608_v24 = vsel %vm3821_vm14, %v3838_v37, 0.0 }
 0x2f8   : > { %4303 = vst [vmem:[#allocation22_spill] sm:$0xff] %v3859_v8  ;;  %4304 = vst [vmem:[#allocation23_spill] sm:$0xff] %v3862_v17  ;;  %v666_v17 = vadd.s32 112, %v3642_v33  ;;  %v4311_v8 = vmov 0  ;;  %v1060_v54 = vsel %vm3733_vm9, %v3713_v63, 0.0  ;;  %v1064_v38 = vsel %vm3784_vm13, %v3775_v7, 0.0 }
 0x2f9   : > { %v4312_v8 = vsel %vm3897_vm3, 4294967295, %v4311_v8  ;;  %v1780_v7 = vld [vmem:[#allocation2 + $0x8f] sm:$0xff] }
 0x2fe   : > { %2941 = vmatmul.mubr.msk.bf16.gmra.mrb[12].mxu1 %vm4252_vm1, %v3669_v48  ;;  %3013 = vmatmul.mubr.msk.bf16.gmra.mrb[12].mxu0 %vm4252_vm1, %v3718_v20  ;;  %v3932_v20 = vld [vmem:[#allocation2 + $0x77] sm:$0xff] }
 0x2ff   : > { %2946 = vmatprep.mubr.msk.bf16.mxu1 %vm4252_vm1, %v748_v26  ;;  %3018 = vmatprep.mubr.msk.bf16.mxu0 %vm4252_vm1, %v1613_v31  ;;  %v3782_v26 = vld [vmem:[#allocation2 + $0x47] sm:$0xff]  ;;  %v1040_v48 = vld [vmem:[#allocation2 + $0x11] sm:$0xff] }
 0x300   : > { %v3788_v31 = vld [vmem:[#allocation2 + $0x61] sm:$0xff]  ;;  %v740_v51 = vsel %vm3777_vm12, %v3782_v26, 0.0  ;;  %v1247_v60 = vsel %vm3765_vm10, %v3782_v26, 0.0 }
 0x301   : > { %v1606_v52 = vsel %vm3784_vm13, %v3788_v31, 0.0 }
 0x306   : > { %2947 = vmatmul.mubr.msk.bf16.vlgmr.msra.gmra.mrb[0].mxu1 %vm4252_vm1, %v749_v53  ;;  %3019 = vmatmul.mubr.msk.bf16.vlgmr.msra.gmra.mrb[0].mxu0 %vm4252_vm1, %v1614_v55  ;;  %v3817_v53 = vld [vmem:[#allocation2 + $0x3f] sm:$0xff]  ;;  %v3834_v55 = vld [vmem:[#allocation2 + $0x4f] sm:$0xff] }
 0x307   : > { %2950 = vmatprep.mubr.msk.bf16.mxu1 %vm4252_vm1, %v750_v1  ;;  %3035 = vmatpush3.bf16.msra.mxu0 %v3651_v36  ;;  %v3836_v1 = vld [vmem:[#allocation2 + $0x59] sm:$0xff]  ;;  %v2146_v36 = vsel %vm3771_vm11, %v3788_v31, 0.0  ;;  %v751_v22 = vpack.c.bf16 %v3817_v53, %v738_v45  ;;  %v752_v4 = vpack.c.bf16 %v3834_v55, %v740_v51  ;;  %v3885_v45 = vpack.c.bf16 %v2150_v13, %v3871_v5  ;;  %v3916_v13 = vld [vmem:[#allocation2 + $0x6f] sm:$0xff] }
 0x308   : > { %3022 = vmatprep.mubr.msk.bf16.mxu0 %vm4252_vm1, %v1615_v44  ;;  %v3852_v44 = vld [vmem:[#allocation2 + $0x69] sm:$0xff]  ;;  %2963 = vmatpush3.bf16.msra.mxu1 %v3691_v2  ;;  %v3865_v23 = vpack.c.bf16 %v2146_v36, %v3836_v1  ;;  %v2152_v36 = vsel %vm3825_vm15, %v1596_v12, 0.0  ;;  %v667_v51 = vadd.s32 120, %v3642_v33  ;;  %v1260_v27 = vpack.c.bf16 %v3834_v55, %v1247_v60 }
 0x309   : > { %3052 = vmatprep.subr.bf16.mxu0 %v3798_v47  ;;  %v1595_v2 = vld [vmem:[#allocation2 + $0x89] sm:$0xff]  ;;  %2980 = vmatprep.subr.bf16.mxu1 %v3813_v19  ;;  %v3875_v42 = vpack.c.bf16 %v2148_v14, %v3852_v44  ;;  %4307 = vst [vmem:[#allocation26_spill] sm:$0xff] %v3885_v45  ;;  %v4309_v14 = vmov 0 }
 0x30a   : > { %4305 = vst [vmem:[#allocation24_spill] sm:$0xff] %v3865_v23  ;;  %v3887_v9 = vpack.c.bf16 %v2152_v36, %v1595_v2  ;;  %v1617_v23 = vpack.c.bf16 %v1606_v52, %v3836_v1  ;;  %v4310_v14 = vsel %vm3890_vm2, 4294967295, %v4309_v14  ;;  %v3907_v52 = vld [vmem:[#allocation2 + $0x5f] sm:$0xff]  ;;  %v683_v33 = vand.u32 15, %v667_v51 }
 0x30b   : > { %4306 = vst [vmem:[#allocation25_spill] sm:$0xff] %v3875_v42  ;;  %v3894_v42 = vld [vmem:[#allocation2 + $0x57] sm:$0xff]  ;;  %v3941_v51 = vld [vmem:[#allocation2 + $0x7f] sm:$0xff] }
 0x30c   : > { %4308 = vst [vmem:[#allocation27_spill] sm:$0xff] %v3887_v9  ;;  %v742_v28 = vsel %vm3890_vm2, %v3894_v42, 0.0  ;;  %v1789_v63 = vsel %vm3765_vm10, %v3894_v42, 0.0 }
 0x30d   : > { %v753_v36 = vpack.c.bf16 %v3907_v52, %v742_v28  ;;  %v1802_v59 = vpack.c.bf16 %v3907_v52, %v1789_v63 }
 0x30e   : > { %2951 = vmatmul.mubr.msk.bf16.gmra.mrb[4].mxu1 %vm4252_vm1, %v751_v22  ;;  %3023 = vmatmul.mubr.msk.bf16.gmra.mrb[4].mxu0 %vm4252_vm1, %v1616_v10  ;;  %v744_v10 = vsel %vm3897_vm3, %v3901_v49, 0.0  ;;  %v682_v22 = vand.u32 15, %v666_v17  ;;  %vm4317_vm3 = vcmask 130048  }
 0x30f   : > { %2954 = vmatprep.mubr.msk.bf16.mxu1 %vm4252_vm1, %v752_v4  ;;  %3026 = vmatprep.mubr.msk.bf16.mxu0 %vm4252_vm1, %v1617_v23  ;;  %v1610_v4 = vsel %vm3825_vm15, %v3854_v6, 0.0  ;;  %v1618_v23 = vpack.c.bf16 %v1608_v24, %v3852_v44  ;;  %v754_v9 = vpack.c.bf16 %v3916_v13, %v744_v10  ;;  %vm3934_vm1 = vcmp.ne.s32.totalorder %v683_v33, 15  ;;  %vm4318_vm15 = vmmov %vm4317_vm3  ;;  %v1039_v10 = vld [vmem:[#allocation2 + $0x9] sm:$0xff] }
 0x310   : > { %v1619_v45 = vpack.c.bf16 %v1610_v4, %v3871_v5  ;;  %vm3928_vm0 = vcmp.ne.s32.totalorder %v682_v22, 0  ;;  %vm4319_vm2 = vmmov %vm4317_vm3  ;;  %v1612_v24 = vsel %vm3934_vm1, %v1596_v12, 0.0  ;;  %v1056_v22 = vsel %vm3678_vm5, %v1040_v48, 0.0 }
 0x311   : > { %v746_v28 = vsel %vm3928_vm0, %v3932_v20, 0.0  ;;  %vm4320_vm14 = vmmov %vm4319_vm2  ;;  %v1783_v4 = vsel %vm3672_vm4, %v3724_v29, 0.0  ;;  %v1620_v33 = vpack.c.bf16 %v1612_v24, %v1595_v2  ;;  %v1058_v12 = vsel %vm3708_vm7, %v3682_v0, 0.0  ;;  %v3300_v24 = vld [vmem:[%s4228_s2 + $0x40] sm:$0xff]   ;;  %v4365_v40 = vld [vmem:[#allocation24_spill] sm:$0xff] }
 0x312   : > { %vm4323_vm5 = vmmov %vm4319_vm2  ;;  %v1785_v48 = vsel %vm3702_vm6, %v3769_v58, 0.0  ;;  %v1787_v2 = vsel %vm3720_vm8, %v3782_v26, 0.0  ;;  %v1073_v0 = vpack.c.bf16 %v1060_v54, %v3737_v39  ;;  %v1791_v39 = vsel %vm3777_vm12, %v3901_v49, 0.0  ;;  %v3301_v54 = vld [vmem:[%s4229_s3] sm:$0xff]  }
 0x313   : > { %v1801_v62 = vpack.c.bf16 %v3834_v55, %v1787_v2  ;;  %vm4324_vm7 = vmmov %vm4319_vm2  ;;  %v4361_v55 = vld [vmem:[#allocation22_spill] sm:$0xff] }
 0x314   : > { %vm4326_vm9 = vmmov %vm4319_vm2 }
 0x315   : > { %vm4330_vm13 = vmmov %vm4319_vm2 }
 0x316   : > { %2955 = vmatmul.mubr.msk.bf16.gmra.mrb[8].mxu1 %vm4317_vm3, %v753_v36  ;;  %3027 = vmatmul.mubr.msk.bf16.gmra.mrb[8].mxu0 %vm4318_vm15, %v1618_v23  ;;  %v1071_v36 = vpack.c.bf16 %v1056_v22, %v1039_v10  ;;  %v1799_v23 = vpack.c.bf16 %v3744_v41, %v1783_v4  ;;  %vm4321_vm15 = vmmov %vm4319_vm2  ;;  %v1803_v10 = vpack.c.bf16 %v3916_v13, %v1791_v39  ;;  %v1779_v22 = vld [vmem:[#allocation2 + $0x87] sm:$0xff] }
 0x317   : > { %2958 = vmatprep.mubr.msk.bf16.mxu1 %vm4319_vm2, %v754_v9  ;;  %3030 = vmatprep.mubr.msk.bf16.mxu0 %vm4320_vm14, %v1619_v45  ;;  %v755_v9 = vpack.c.bf16 %v3941_v51, %v746_v28  ;;  %vm4322_vm14 = vmmov %vm4319_vm2  ;;  %v1072_v45 = vpack.c.bf16 %v1058_v12, %v3697_v57  ;;  %v1800_v28 = vpack.c.bf16 %v3817_v53, %v1785_v48  ;;  %v1062_v57 = vsel %vm3771_vm11, %v3749_v43, 0.0 }
 0x318   : > { %vm4325_vm3 = vmmov %vm4319_vm2  ;;  %v1074_v43 = vpack.c.bf16 %v1062_v57, %v3760_v3  ;;  %v1255_v56 = vsel %vm3928_vm0, %v1779_v22, 0.0 }
 0x319   : > { %vm4328_vm11 = vmmov %vm4319_vm2 }
 0x31e   : > { %2959 = vmatmul.mubr.msk.bf16.gmra.mrb[12].mxu1 %vm4321_vm15, %v755_v9  ;;  %3031 = vmatmul.mubr.msk.bf16.gmra.mrb[12].mxu0 %vm4322_vm14, %v1620_v33  ;;  %vm4327_vm15 = vmmov %vm4319_vm2  ;;  %v1781_v33 = vld [vmem:[#allocation2 + $0x97] sm:$0xff] }
 0x31f   : > { %2964 = vmatprep.mubr.msk.bf16.mxu1 %vm4319_vm2, %v1071_v36  ;;  %3036 = vmatprep.mubr.msk.bf16.mxu0 %vm4323_vm5, %v1799_v23  ;;  %vm4329_vm14 = vmmov %vm4319_vm2  ;;  %vm4331_vm2 = vnez %v4299_v18 }
 0x320   : > { %vm4332_vm5 = vmmov %vm4325_vm3 }
 0x326   : > { %2965 = vmatmul.mubr.msk.bf16.vlgmr.msra.gmra.mrb[0].mxu1 %vm4324_vm7, %v1072_v45  ;;  %3037 = vmatmul.mubr.msk.bf16.vlgmr.msra.gmra.mrb[0].mxu0 %vm4325_vm3, %v1800_v28  ;;  %vm4333_vm7 = vnez %v4310_v14  ;;  %vm4334_vm3 = vnez %v4301_v16  ;;  %v1070_v16 = vsel %vm3934_vm1, %v3854_v6, 0.0  ;;  %v1243_v6 = vsel %vm3702_vm6, %v3724_v29, 0.0  ;;  %v2138_v14 = vld [vmem:[#allocation2 + $0xa1] sm:$0xff] }
 0x327   : > { %2968 = vmatprep.mubr.msk.bf16.mxu1 %vm4326_vm9, %v1073_v0  ;;  %3053 = vmatpush3.bf16.msra.mxu0 %v3798_v47  ;;  %v1075_v47 = vpack.c.bf16 %v1064_v38, %v3819_v25  ;;  %v1793_v3 = vsel %vm4333_vm7, %v3932_v20, 0.0  ;;  %v1068_v25 = vsel %vm4334_vm3, %v3838_v37, 0.0  ;;  %vm4335_vm9 = vnez %v4312_v8  ;;  %v1782_v37 = vld [vmem:[#allocation2 + $0x9f] sm:$0xff]  ;;  %v4363_v8 = vld [vmem:[#allocation23_spill] sm:$0xff] }
 0x328   : > { %3040 = vmatprep.mubr.msk.bf16.mxu0 %vm4327_vm15, %v1801_v62  ;;  %2981 = vmatpush3.bf16.msra.mxu1 %v3813_v19  ;;  %v1066_v19 = vsel %vm4331_vm2, %v3788_v31, 0.0  ;;  %v1795_v30 = vsel %vm4335_vm9, %v1779_v22, 0.0  ;;  %v1804_v9 = vpack.c.bf16 %v3941_v51, %v1793_v3  ;;  %v1077_v18 = vpack.c.bf16 %v1068_v25, %v3852_v44  ;;  %vm4336_vm15 = vmmov %vm4332_vm5  ;;  %v4113_v3 = vld [vmem:[%s4231_s5] ss:$0 sm:$0xff] }
 0x329   : > { %3070 = vmatprep.subr.bf16.mxu0 %v3300_v24  ;;  %v1076_v4 = vpack.c.bf16 %v1066_v19, %v3836_v1  ;;  %v1805_v31 = vpack.c.bf16 %v1780_v7, %v1795_v30  ;;  %v1797_v1 = vsel %vm3928_vm0, %v1781_v33, 0.0  ;;  %v1241_v44 = vsel %vm3672_vm4, %v3706_v61, 0.0  ;;  %vm4340_vm2 = vmmov %vm4332_vm5  ;;  %3088 = vmatprep.subr.bf16.mxu1 %v3301_v54 }
 0x32a   : > { %v1078_v36 = vpack.c.bf16 %v1070_v16, %v3871_v5  ;;  %v1806_v23 = vpack.c.bf16 %v1782_v37, %v1797_v1  ;;  %v1257_v12 = vpack.c.bf16 %v3728_v32, %v1241_v44  ;;  %vm4342_vm3 = vmmov %vm4340_vm2  ;;  %v1245_v5 = vsel %vm3720_vm8, %v3769_v58, 0.0  ;;  %v4355_v58 = vld [vmem:[#allocation20_spill] sm:$0xff] }
 0x32b   : > { %v1258_v50 = vpack.c.bf16 %v3744_v41, %v1243_v6  ;;  %v1259_v61 = vpack.c.bf16 %v3817_v53, %v1245_v5  ;;  %vm4344_vm4 = vmmov %vm4340_vm2  ;;  %v4359_v53 = vld [vmem:[#allocation21_spill] sm:$0xff] }
 0x32c   : > { %vm4347_vm6 = vmmov %vm4340_vm2 }
 0x32d   : > { %vm4348_vm8 = vmmov %vm4340_vm2 }
 0x32e   : > { %2969 = vmatmul.mubr.msk.bf16.gmra.mrb[4].mxu1 %vm4328_vm11, %v1074_v43  ;;  %3041 = vmatmul.mubr.msk.bf16.gmra.mrb[4].mxu0 %vm4329_vm14, %v1802_v59  ;;  %vm4337_vm11 = vmmov %vm4332_vm5 }
 0x32f   : > { %2972 = vmatprep.mubr.msk.bf16.mxu1 %vm4330_vm13, %v1075_v47  ;;  %3044 = vmatprep.mubr.msk.bf16.mxu0 %vm4332_vm5, %v1803_v10  ;;  %vm4338_vm14 = vmmov %vm4332_vm5 }
 0x330   : > { %vm4339_vm13 = vmmov %vm4332_vm5 }
 0x331   : > { %vm4341_vm5 = vmmov %vm4340_vm2 }
 0x332   : > { %vm4350_vm10 = vmmov %vm4340_vm2 }
 0x333   : > { %vm4366_vm0 = vmmov %vm4340_vm2 }
 0x336   : > { %2973 = vmatmul.mubr.msk.bf16.gmra.mrb[8].mxu1 %vm4336_vm15, %v1076_v4  ;;  %3045 = vmatmul.mubr.msk.bf16.gmra.mrb[8].mxu0 %vm4337_vm11, %v1804_v9  ;;  %vm4343_vm15 = vmmov %vm4340_vm2 }
 0x337   : > { %2976 = vmatprep.mubr.msk.bf16.mxu1 %vm4338_vm14, %v1077_v18  ;;  %3048 = vmatprep.mubr.msk.bf16.mxu0 %vm4339_vm13, %v1805_v31  ;;  %vm4345_vm11 = vmmov %vm4340_vm2 }
 0x338   : > { %vm4346_vm14 = vmmov %vm4340_vm2 }
 0x339   : > { %vm4349_vm13 = vmmov %vm4340_vm2 }
 0x33e   : > { %2977 = vmatmul.mubr.msk.bf16.gmra.mrb[12].mxu1 %vm4340_vm2, %v1078_v36  ;;  %3049 = vmatmul.mubr.msk.bf16.gmra.mrb[12].mxu0 %vm4341_vm5, %v1806_v23  ;;  %vm4353_vm5 = vmmov %vm4340_vm2 }
 0x33f   : > { %2982 = vmatprep.mubr.msk.bf16.mxu1 %vm4342_vm3, %v1257_v12  ;;  %3054 = vmatprep.mubr.msk.bf16.mxu0 %vm4343_vm15, %v3623_v11  ;;  %v1249_v11 = vsel %vm3777_vm12, %v3894_v42, 0.0  ;;  %vm4351_vm12 = vmmov %vm4340_vm2  ;;  %v4367_v42 = vld [vmem:[#allocation25_spill] sm:$0xff] }
 0x340   : > { %v1261_v29 = vpack.c.bf16 %v3907_v52, %v1249_v11  ;;  %vm4354_vm3 = vmmov %vm4340_vm2  ;;  %v4371_v52 = vld [vmem:[#allocation27_spill] sm:$0xff] }
 0x341   : > { %vm4358_vm15 = vmmov %vm4340_vm2 }
 0x346   : > { %2983 = vmatmul.mubr.msk.bf16.vlgmr.msra.gmra.mrb[0].mxu1 %vm4344_vm4, %v1258_v50  ;;  %3055 = vmatmul.mubr.msk.bf16.vlgmr.msra.gmra.mrb[0].mxu0 %vm4345_vm11, %v3631_v21  ;;  %v1251_v21 = vsel %vm4333_vm7, %v3901_v49, 0.0  ;;  %vm4356_vm7 = vmmov %vm4340_vm2  ;;  %v4369_v49 = vld [vmem:[#allocation26_spill] sm:$0xff] }
 0x347   : > { %2986 = vmatprep.mubr.msk.bf16.mxu1 %vm4346_vm14, %v1259_v61  ;;  %3071 = vmatpush3.bf16.msra.mxu0 %v3300_v24  ;;  %v1262_v32 = vpack.c.bf16 %v3916_v13, %v1251_v21  ;;  %vm4360_vm4 = vmmov %vm4340_vm2  ;;  %v2137_v13 = vld [vmem:[#allocation2 + $0x99] sm:$0xff] }
 0x348   : > { %3058 = vmatprep.mubr.msk.bf16.mxu0 %vm4347_vm6, %v3644_v34  ;;  %v1253_v34 = vsel %vm4335_vm9, %v3932_v20, 0.0  ;;  %v1264_v20 = vpack.c.bf16 %v1780_v7, %v1255_v56  ;;  %vm4357_vm9 = vmmov %vm4340_vm2  ;;  %3089 = vmatpush3.bf16.msra.mxu1 %v3301_v54 }
 0x349   : > { %v1263_v41 = vpack.c.bf16 %v3941_v51, %v1253_v34  ;;  %vm4362_vm11 = vmmov %vm4340_vm2  ;;  %v2154_v51 = vsel %vm3934_vm1, %v2138_v14, 0.0 }
 0x34a   : > { %vm4364_vm14 = vmmov %vm4340_vm2  ;;  %v2162_v48 = vpack.c.bf16 %v2154_v51, %v2137_v13 }
 0x34b   : > { %vm4368_vm6 = vmmov %vm4366_vm0 }
 0x34c   : > { %vm4374_vm1 = vmmov %vm4366_vm0 }
 0x34e   : > { %2987 = vmatmul.mubr.msk.bf16.gmra.mrb[4].mxu1 %vm4348_vm8, %v1260_v27  ;;  %3059 = vmatmul.mubr.msk.bf16.gmra.mrb[4].mxu0 %vm4349_vm13, %v3646_v35  ;;  %v4352_v35 = vld [vmem:[#allocation19_spill] sm:$0xff]  ;;  %vm4370_vm8 = vmmov %vm4366_vm0 }
 0x34f   : > { %2990 = vmatprep.mubr.msk.bf16.mxu1 %vm4340_vm2, %v1261_v29  ;;  %3062 = vmatprep.mubr.msk.bf16.mxu0 %vm4350_vm10, %v3666_v46  ;;  %v1967_v46 = vld [vmem:[#allocation2 + $0x98] sm:$0xff]  ;;  %vm4372_vm13 = vmmov %vm4366_vm0 }
 0x350   : > { %v1976_v26 = vpack.c.bf16 %v1968_v15, %v1967_v46  ;;  %vm4373_vm2 = vmmov %vm4366_vm0 }
 0x351   : > { %vm4375_vm10 = vmmov %vm4366_vm0 }
 0x356   : > { %2991 = vmatmul.mubr.msk.bf16.gmra.mrb[8].mxu1 %vm4351_vm12, %v1262_v32  ;;  %3063 = vmatmul.mubr.msk.bf16.gmra.mrb[8].mxu0 %vm4353_vm5, %v4352_v35  ;;  %vm4376_vm12 = vmmov %vm4366_vm0 }
 0x357   : > { %2994 = vmatprep.mubr.msk.bf16.mxu1 %vm4354_vm3, %v1263_v41  ;;  %3066 = vmatprep.mubr.msk.bf16.mxu0 %vm4356_vm7, %v4355_v58  ;;  %vm4377_vm5 = vmmov %vm4366_vm0 }
 0x358   : > { %vm4378_vm3 = vmmov %vm4366_vm0 }
 0x359   : > { %vm4379_vm7 = vmmov %vm4366_vm0 }
 0x35e   : > { %2995 = vmatmul.mubr.msk.bf16.gmra.mrb[12].mxu1 %vm4357_vm9, %v1264_v20  ;;  %3067 = vmatmul.mubr.msk.bf16.gmra.mrb[12].mxu0 %vm4358_vm15, %v1976_v26  ;;  %vm4380_vm9 = vmmov %vm4366_vm0 }
 0x35f   : > { %3072 = vmatprep.mubr.msk.bf16.mxu0 %vm4360_vm4, %v4359_v53  ;;  %vm4381_vm15 = vmmov %vm4366_vm0  ;;  %vm4386_vm4 = vcmask 523264  }
 0x366   : > { %3073 = vmatmul.mubr.msk.bf16.vlgmr.msra.gmra.mrb[0].mxu0 %vm4362_vm11, %v4361_v55  ;;  %vm4387_vm11 = vmmov %vm4386_vm4 }
 0x367   : > { %3076 = vmatprep.mubr.msk.bf16.mxu0 %vm4364_vm14, %v4363_v8  ;;  %vm4388_vm14 = vmmov %vm4386_vm4 }
 0x36e   : > { %3077 = vmatmul.mubr.msk.bf16.gmra.mrb[4].mxu0 %vm4366_vm0, %v4365_v40  ;;  %vm4389_vm0 = vmmov %vm4386_vm4 }
 0x36f   : > { %3080 = vmatprep.mubr.msk.bf16.mxu0 %vm4368_vm6, %v4367_v42  ;;  %vm4394_vm6 = vmmov %vm4389_vm0 }
 0x376   : > { %3081 = vmatmul.mubr.msk.bf16.gmra.mrb[8].mxu0 %vm4370_vm8, %v4369_v49  ;;  %vm4395_vm8 = vmmov %vm4389_vm0 }
 0x377   : > { %3084 = vmatprep.mubr.msk.bf16.mxu0 %vm4372_vm13, %v4371_v52  ;;  %vm4396_vm13 = vmmov %vm4389_vm0 }
 0x37e   : > { %3085 = vmatmul.mubr.msk.bf16.gmra.mrb[12].mxu0 %vm4373_vm2, %v2162_v48  ;;  %vm4397_vm2 = vmmov %vm4389_vm0 }
 0x419   : > { %v2984_v2 = vpop.f32.mrb[0].mxu1 }
 0x41a   : > { %v1332_v45 = vpop.f32.mrb[1].mxu1 }
 0x41b   : > { %v2985_v28 = vpop.f32.mrb[2].mxu1 }
 0x41c   : > { %v1335_v0 = vpop.f32.mrb[3].mxu1 }
 0x421   : > { %v2988_v62 = vpop.f32.mrb[4].mxu1 }
 0x422   : > { %v1348_v24 = vpop.f32.mrb[5].mxu1 }
 0x423   : > { %v2989_v57 = vpop.f32.mrb[6].mxu1 }
 0x424   : > { %v1351_v63 = vpop.f32.mrb[7].mxu1 }
 0x429   : > { %v2992_v38 = vpop.f32.mrb[8].mxu1 }
 0x42a   : > { %v1364_v17 = vpop.f32.mrb[9].mxu1 }
 0x42b   : > { %v2993_v39 = vpop.f32.mrb[10].mxu1 }
 0x42c   : > { %v1367_v43 = vpop.f32.mrb[11].mxu1 }
 0x431   : > { %v2996_v59 = vpop.f32.mrb[12].mxu1 }
 0x432   : > { %v4104_v47 = vpop.f32.mrb[13].mxu1 }
 0x433   : > { %v4106_v10 = vpop.f32.mrb[14].mxu1 }
 0x434   : > { %v4108_v22 = vpop.f32.mrb[15].mxu1 }
 0x439   : > { %v3074_v19 = vpop.f32.mrb[0].mxu0 }
 0x43a   : > { %v3114_v25 = vadd.f32 %v3074_v19, %v2984_v2  ;;  %v2230_v7 = vpop.f32.mrb[1].mxu0 }
 0x43b   : > { %v3115_v30 = vadd.f32 %v2230_v7, %v1332_v45  ;;  %v3075_v4 = vpop.f32.mrb[2].mxu0 }
 0x43c   : > { %v2318_v9 = vadd.f32 %v3114_v25, %v4113_v3  ;;  %v3116_v18 = vadd.f32 %v3075_v4, %v2985_v28  ;;  %v2233_v31 = vpop.f32.mrb[3].mxu0 }
 0x43d   : > { %v2316_v33 = vadd.f32 %v3115_v30, %v4113_v3  ;;  %v3117_v16 = vadd.f32 %v2233_v31, %v1335_v0 }
 0x43e   : > { %v2319_v37 = vadd.f32 %v3116_v18, %v4113_v3  ;;  %v2334_v44 = vmax.f32 %v2318_v9, 0.0 }
 0x43f   : > { %v2317_v1 = vadd.f32 %v3117_v16, %v4113_v3  ;;  %v2332_v23 = vmax.f32 %v2316_v33, 0.0 }
 0x440   : > { %v2335_v36 = vmax.f32 %v2319_v37, 0.0 }
 0x441   : > { %v2333_v12 = vmax.f32 %v2317_v1, 0.0  ;;  %v3078_v6 = vpop.f32.mrb[4].mxu0 }
 0x442   : > { %v2349_v5 = vpack.c.bf16 %v2335_v36, %v2334_v44  ;;  %v3118_v50 = vadd.f32 %v3078_v6, %v2988_v62  ;;  %v2246_v61 = vpop.f32.mrb[5].mxu0 }
 0x443   : > { %v3119_v60 = vadd.f32 %v2246_v61, %v1348_v24  ;;  %v3079_v11 = vpop.f32.mrb[6].mxu0  ;;  %v2348_v27 = vpack.c.bf16 %v2333_v12, %v2332_v23  ;;  %v4382_v23 = vld [vmem:[#allocation7_spill] sm:$0xff] }
 0x444   : > { %v2322_v29 = vadd.f32 %v3118_v50, %v4113_v3  ;;  %v3120_v21 = vadd.f32 %v3079_v11, %v2989_v57  ;;  %v2249_v34 = vpop.f32.mrb[7].mxu0  ;;  %v4383_v50 = vld [vmem:[#allocation3_spill] sm:$0xff] }
 0x445   : > { %v2320_v32 = vadd.f32 %v3119_v60, %v4113_v3  ;;  %v3121_v41 = vadd.f32 %v2249_v34, %v1351_v63  ;;  %3090 = vmatprep.mubr.msk.bf16.mxu1 %vm4374_vm1, %v2348_v27  ;;  %v4384_v27 = vld [vmem:[#allocation8_spill] sm:$0xff]  ;;  %vm4402_vm1 = vmmov %vm4389_vm0 }
 0x446   : > { %v2323_v35 = vadd.f32 %v3120_v21, %v4113_v3  ;;  %3091 = vmatmul.mubr.msk.bf16.vlgmr.msra.gmra.mrb[16].mxu1 %vm4375_vm10, %v2349_v5  ;;  %v2338_v58 = vmax.f32 %v2322_v29, 0.0  ;;  %v4385_v34 = vld [vmem:[#allocation4_spill] sm:$0xff]  ;;  %vm4403_vm10 = vmmov %vm4389_vm0 }
 0x447   : > { %v2321_v56 = vadd.f32 %v3121_v41, %v4113_v3  ;;  %v2336_v15 = vmax.f32 %v2320_v32, 0.0 }
 0x448   : > { %v2339_v46 = vmax.f32 %v2323_v35, 0.0 }
 0x449   : > { %v2337_v20 = vmax.f32 %v2321_v56, 0.0  ;;  %v3082_v26 = vpop.f32.mrb[8].mxu0 }
 0x44a   : > { %v3122_v53 = vadd.f32 %v3082_v26, %v2992_v38  ;;  %v2262_v55 = vpop.f32.mrb[9].mxu0  ;;  %v2351_v8 = vpack.c.bf16 %v2339_v46, %v2338_v58  ;;  %v4390_v26 = vld [vmem:[#allocation15_spill] sm:$0xff] }
 0x44b   : > { %v3123_v40 = vadd.f32 %v2262_v55, %v1364_v17  ;;  %v3083_v42 = vpop.f32.mrb[10].mxu0  ;;  %v2350_v14 = vpack.c.bf16 %v2337_v20, %v2336_v15 }
 0x44c   : > { %v2326_v49 = vadd.f32 %v3122_v53, %v4113_v3  ;;  %v3124_v52 = vadd.f32 %v3083_v42, %v2993_v39  ;;  %v2265_v13 = vpop.f32.mrb[11].mxu0 }
 0x44d   : > { %v2324_v51 = vadd.f32 %v3123_v40, %v4113_v3  ;;  %v3125_v48 = vadd.f32 %v2265_v13, %v1367_v43  ;;  %3094 = vmatprep.mubr.msk.bf16.mxu1 %vm4376_vm12, %v2350_v14  ;;  %v4391_v40 = vld [vmem:[#allocation11_spill] sm:$0xff]  ;;  %vm4404_vm12 = vmmov %vm4389_vm0 }
 0x44e   : > { %v2327_v54 = vadd.f32 %v3124_v52, %v4113_v3  ;;  %3095 = vmatmul.mubr.msk.bf16.gmra.mrb[20].mxu1 %vm4377_vm5, %v2351_v8  ;;  %v2342_v45 = vmax.f32 %v2326_v49, 0.0  ;;  %v4392_v52 = vld [vmem:[#allocation16_spill] sm:$0xff]  ;;  %vm4405_vm5 = vmmov %vm4389_vm0 }
 0x44f   : > { %v2325_v2 = vadd.f32 %v3125_v48, %v4113_v3  ;;  %v2340_v0 = vmax.f32 %v2324_v51, 0.0  ;;  %v4393_v48 = vld [vmem:[#allocation12_spill] sm:$0xff] }
 0x450   : > { %v2343_v28 = vmax.f32 %v2327_v54, 0.0 }
 0x451   : > { %v2341_v62 = vmax.f32 %v2325_v2, 0.0  ;;  %v3086_v24 = vpop.f32.mrb[12].mxu0 }
 0x452   : > { %v3126_v57 = vadd.f32 %v3086_v24, %v2996_v59  ;;  %v2278_v63 = vpop.f32.mrb[13].mxu0  ;;  %v2353_v38 = vpack.c.bf16 %v2343_v28, %v2342_v45 }
 0x453   : > { %v3127_v17 = vadd.f32 %v2278_v63, %v4104_v47  ;;  %v3087_v39 = vpop.f32.mrb[14].mxu0  ;;  %v2352_v43 = vpack.c.bf16 %v2341_v62, %v2340_v0  ;;  %v4398_v63 = vld [vmem:[#allocation9_spill] sm:$0xff] }
 0x454   : > { %v2330_v19 = vadd.f32 %v3126_v57, %v4113_v3  ;;  %v3128_v25 = vadd.f32 %v3087_v39, %v4106_v10  ;;  %v2281_v7 = vpop.f32.mrb[15].mxu0  ;;  %v4145_v10 = vld [vmem:[%s4232_s6] ss:$0 sm:$0xff] }
 0x455   : > { %v2328_v30 = vadd.f32 %v3127_v17, %v4113_v3  ;;  %v3129_v4 = vadd.f32 %v2281_v7, %v4108_v22  ;;  %3098 = vmatprep.mubr.msk.bf16.mxu1 %vm4378_vm3, %v2352_v43  ;;  %v4399_v43 = vld [vmem:[#allocation5_spill] sm:$0xff]  ;;  %vm4410_vm3 = vmmov %vm4389_vm0 }
 0x456   : > { %v2331_v9 = vadd.f32 %v3128_v25, %v4113_v3  ;;  %3099 = vmatmul.mubr.msk.bf16.gmra.mrb[24].mxu1 %vm4379_vm7, %v2353_v38  ;;  %v2346_v47 = vmax.f32 %v2330_v19, 0.0  ;;  %vm4411_vm7 = vmmov %vm4389_vm0 }
 0x457   : > { %v2329_v59 = vadd.f32 %v3129_v4, %v4113_v3  ;;  %v2344_v31 = vmax.f32 %v2328_v30, 0.0  ;;  %v4400_v30 = vld [vmem:[#allocation10_spill] sm:$0xff] }
 0x458   : > { %v2347_v18 = vmax.f32 %v2331_v9, 0.0 }
 0x459   : > { %v2345_v33 = vmax.f32 %v2329_v59, 0.0  ;;  %v4401_v59 = vld [vmem:[#allocation6_spill] sm:$0xff] }
 0x45a   : > { %v2355_v16 = vpack.c.bf16 %v2347_v18, %v2346_v47 }
 0x45b   : > { %v2354_v37 = vpack.c.bf16 %v2345_v33, %v2344_v31 }
 0x45d   : > { %3102 = vmatprep.mubr.msk.bf16.mxu1 %vm4380_vm9, %v2354_v37  ;;  %vm4412_vm9 = vmmov %vm4389_vm0 }
 0x45e   : > { %3103 = vmatmul.mubr.msk.bf16.gmra.mrb[28].mxu1 %vm4381_vm15, %v2355_v16  ;;  %vm4413_vm15 = vmmov %vm4389_vm0 }
 0x519   : > { %v3092_v22 = vpop.f32.mrb[16].mxu1 }
 0x51a   : > { %v2438_v3 = vadd.f32 %v3092_v22, %v4145_v10  ;;  %v2429_v1 = vpop.f32.mrb[17].mxu1 }
 0x51b   : > { %v2430_v44 = vadd.f32 %v4145_v10, %v2429_v1  ;;  %v3093_v36 = vpop.f32.mrb[18].mxu1  ;;  %v4406_v1 = vld [vmem:[#allocation17_spill] sm:$0xff] }
 0x51c   : > { %v2494_v12 = vadd.f32 %v2438_v3, %v4382_v23  ;;  %v2441_v6 = vadd.f32 %v3093_v36, %v4145_v10  ;;  %v2432_v5 = vpop.f32.mrb[19].mxu1 }
 0x51d   : > { %v2492_v61 = vadd.f32 %v2430_v44, %v4383_v50  ;;  %v2433_v60 = vadd.f32 %v4145_v10, %v2432_v5 }
 0x51e   : > { %v2510_v11 = vmax.f32 %v2494_v12, 0.0  ;;  %v2495_v29 = vadd.f32 %v2441_v6, %v4384_v27  ;;  %v4407_v12 = vld [vmem:[#allocation13_spill] sm:$0xff]  ;;  %v4409_v27 = vld [vmem:[#allocation14_spill] sm:$0xff] }
 0x51f   : > { %v2508_v21 = vmax.f32 %v2492_v61, 0.0  ;;  %v2493_v32 = vadd.f32 %v2433_v60, %v4385_v34  ;;  %v4408_v61 = vld [vmem:[#allocation18_spill] sm:$0xff] }
 0x520   : > { %2526 = vst.msk [vmem:[%s3452_s22 + $0x10] sm:$0xff] %vm4386_vm4, %v2510_v11  ;;  %v2511_v41 = vmax.f32 %v2495_v29, 0.0 }
 0x521   : > { %2524 = vst.msk [vmem:[%s3452_s22] sm:$0xff] %vm4387_vm11, %v2508_v21  ;;  %v2509_v35 = vmax.f32 %v2493_v32, 0.0  ;;  %v3096_v56 = vpop.f32.mrb[20].mxu1 }
 0x522   : > { %2527 = vst.msk [vmem:[%s3452_s22 + $0x18] sm:$0xff] %vm4388_vm14, %v2511_v41  ;;  %v2454_v58 = vadd.f32 %v3096_v56, %v4145_v10  ;;  %v2445_v46 = vpop.f32.mrb[21].mxu1 }
 0x523   : > { %2525 = vst.msk [vmem:[%s3452_s22 + $0x8] sm:$0xff] %vm4389_vm0, %v2509_v35  ;;  %v2446_v15 = vadd.f32 %v4145_v10, %v2445_v46  ;;  %v3097_v20 = vpop.f32.mrb[22].mxu1 }
 0x524   : > { %v2498_v53 = vadd.f32 %v2454_v58, %v4390_v26  ;;  %v2457_v55 = vadd.f32 %v3097_v20, %v4145_v10  ;;  %v2448_v8 = vpop.f32.mrb[23].mxu1 }
 0x525   : > { %v2496_v42 = vadd.f32 %v2446_v15, %v4391_v40  ;;  %v2449_v14 = vadd.f32 %v4145_v10, %v2448_v8 }
 0x526   : > { %v2514_v49 = vmax.f32 %v2498_v53, 0.0  ;;  %v2499_v13 = vadd.f32 %v2457_v55, %v4392_v52 }
 0x527   : > { %v2512_v51 = vmax.f32 %v2496_v42, 0.0  ;;  %v2497_v54 = vadd.f32 %v2449_v14, %v4393_v48 }
 0x528   : > { %2530 = vst.msk [vmem:[%s3452_s22 + $0x30] sm:$0xff] %vm4394_vm6, %v2514_v49  ;;  %v2515_v2 = vmax.f32 %v2499_v13, 0.0 }
 0x529   : > { %2528 = vst.msk [vmem:[%s3452_s22 + $0x20] sm:$0xff] %vm4395_vm8, %v2512_v51  ;;  %v2513_v45 = vmax.f32 %v2497_v54, 0.0  ;;  %v3100_v28 = vpop.f32.mrb[24].mxu1 }
 0x52a   : > { %2531 = vst.msk [vmem:[%s3452_s22 + $0x38] sm:$0xff] %vm4396_vm13, %v2515_v2  ;;  %v2470_v0 = vadd.f32 %v3100_v28, %v4145_v10  ;;  %v2461_v62 = vpop.f32.mrb[25].mxu1 }
 0x52b   : > { %2529 = vst.msk [vmem:[%s3452_s22 + $0x28] sm:$0xff] %vm4397_vm2, %v2513_v45  ;;  %v2462_v24 = vadd.f32 %v4145_v10, %v2461_v62  ;;  %v3101_v57 = vpop.f32.mrb[26].mxu1 }
 0x52c   : > { %v2502_v38 = vadd.f32 %v2470_v0, %v4398_v63  ;;  %v2473_v17 = vadd.f32 %v3101_v57, %v4145_v10  ;;  %v2464_v39 = vpop.f32.mrb[27].mxu1 }
 0x52d   : > { %v2500_v19 = vadd.f32 %v2462_v24, %v4399_v43  ;;  %v2465_v25 = vadd.f32 %v4145_v10, %v2464_v39 }
 0x52e   : > { %v2518_v7 = vmax.f32 %v2502_v38, 0.0  ;;  %v2503_v4 = vadd.f32 %v2473_v17, %v4400_v30 }
 0x52f   : > { %v2516_v9 = vmax.f32 %v2500_v19, 0.0  ;;  %v2501_v47 = vadd.f32 %v2465_v25, %v4401_v59 }
 0x530   : > { %2534 = vst.msk [vmem:[%s3452_s22 + $0x50] sm:$0xff] %vm4402_vm1, %v2518_v7  ;;  %v2519_v18 = vmax.f32 %v2503_v4, 0.0 }
 0x531   : > { %2532 = vst.msk [vmem:[%s3452_s22 + $0x40] sm:$0xff] %vm4403_vm10, %v2516_v9  ;;  %v2517_v31 = vmax.f32 %v2501_v47, 0.0  ;;  %v3104_v33 = vpop.f32.mrb[28].mxu1 }
 0x532   : > { %2535 = vst.msk [vmem:[%s3452_s22 + $0x58] sm:$0xff] %vm4404_vm12, %v2519_v18  ;;  %v2486_v16 = vadd.f32 %v3104_v33, %v4145_v10  ;;  %v2477_v37 = vpop.f32.mrb[29].mxu1 }
 0x533   : > { %2533 = vst.msk [vmem:[%s3452_s22 + $0x48] sm:$0xff] %vm4405_vm5, %v2517_v31  ;;  %v2478_v22 = vadd.f32 %v4145_v10, %v2477_v37  ;;  %v3105_v3 = vpop.f32.mrb[30].mxu1 }
 0x534   : > { %v2506_v44 = vadd.f32 %v2486_v16, %v4406_v1  ;;  %v2489_v36 = vadd.f32 %v3105_v3, %v4145_v10  ;;  %v2480_v23 = vpop.f32.mrb[31].mxu1 }
 0x535   : > { %v2504_v6 = vadd.f32 %v2478_v22, %v4407_v12  ;;  %v2481_v5 = vadd.f32 %v4145_v10, %v2480_v23 }
 0x536   : > { %v2522_v50 = vmax.f32 %v2506_v44, 0.0  ;;  %v2507_v60 = vadd.f32 %v2489_v36, %v4408_v61 }
 0x537   : > { %v2520_v11 = vmax.f32 %v2504_v6, 0.0  ;;  %v2505_v29 = vadd.f32 %v2481_v5, %v4409_v27 }
 0x538   : > { %2538 = vst.msk [vmem:[%s3452_s22 + $0x70] sm:$0xff] %vm4410_vm3, %v2522_v50  ;;  %v2523_v21 = vmax.f32 %v2507_v60, 0.0 }
 0x539   : > { %2536 = vst.msk [vmem:[%s3452_s22 + $0x60] sm:$0xff] %vm4411_vm7, %v2520_v11  ;;  %v2521_v34 = vmax.f32 %v2505_v29, 0.0 }
 0x53a   : > { %2539 = vst.msk [vmem:[%s3452_s22 + $0x78] sm:$0xff] %vm4412_vm9, %v2523_v21 }
 0x53b   : > { %2537 = vst.msk [vmem:[%s3452_s22 + $0x68] sm:$0xff] %vm4413_vm15, %v2521_v34 }
 0x53c PF: > { %s17_s28 = sadd.s32 1, %s3340_s28   ;;  %s4414_s24 = smov %s3332_s26 }
 0x53d   : > { %p14_p11 = scmp.ge.s32.totalorder %s17_s28, 6   ;;  %s4415_s25 = smov %s3336_s27 }
 0x53e   : > { %s4416_s26 = smov %s4419_s29  ;;  %s4417_s27 = smov %s4423_s30 }
 0x53f   :  { %16 = sbr.rel (!%p14_p11) target bundleno = 3 (0x3), region = 105 }

</bundles_post_ra>
